<compile_context>
chip_gen: v5e
topology: v5e:2x2
jax: 0.10.0
libtpu: 0.0.40
codegen_flags: <defaults>
</compile_context>

<pallas_src>
import jax
import jax.numpy as jnp
from jax import lax
from jax.experimental import pallas as pl
from jax.experimental.pallas import tpu as pltpu

LN_EPS = 1e-5  # PyTorch nn.LayerNorm default

# Module concat order expressed as (pd, ph, pw) parities:
#   x0(0,0,0) x1(1,0,0) x2(0,1,0) x3(0,0,1) x4(1,1,0) x5(1,0,1) x6(0,1,1) x7(1,1,1)
# Lexicographic order j=(pd,ph,pw) maps to module segment _LEX_TO_MODULE[j].
_LEX_TO_MODULE = (0, 3, 2, 6, 1, 5, 4, 7)


def _round_up(x, m):
    return ((x + m - 1) // m) * m


def _merge_kernel(x_ref, w_ref, bias_ref, o_ref):
    # x_ref: (tm, 8C)  w_ref: (8C, 2C) (gamma folded)  bias_ref: (1, 2C) f32
    # o_ref: (tm, 2C)
    x = x_ref[...].astype(jnp.float32)
    # One-pass LayerNorm statistics (f32).
    s1 = jnp.mean(x, axis=-1, keepdims=True)
    s2 = jnp.mean(x * x, axis=-1, keepdims=True)
    var = s2 - s1 * s1
    xn = (x - s1) * lax.rsqrt(var + LN_EPS)
    # MXU matmul: follow the weight dtype (bf16 weights -> bf16 MXU path),
    # accumulate in f32 regardless.
    acc = jnp.dot(xn.astype(w_ref.dtype), w_ref[...],
                  preferred_element_type=jnp.float32)
    o_ref[...] = (acc + bias_ref[...]).astype(o_ref.dtype)


def patch_merging_3d(x, input_resolution, weight_t, gamma, beta, *, tm=512):
    """Forward of PatchMerging3D.

    x:        (B, N, C) with N = D*H*W
    weight_t: (8C, 2C)  -- transpose of PyTorch Linear weight (out, in)
    gamma:    (8C,)     -- LayerNorm weight
    beta:     (8C,)     -- LayerNorm bias
    returns:  (B, N//8, 2C)
    """
    B, N, C = x.shape
    D, H, W = input_resolution
    assert N == D * H * W, "Input has incorrect size"
    D2, H2, W2 = D // 2, H // 2, W // 2
    C8, C2 = 8 * C, 2 * C
    M = B * D2 * H2 * W2

    # --- 8-neighbor repack via a single reshape/transpose (lexicographic parity
    # order on the 8C axis). The module's ordering is recovered below by
    # permuting the parameter rows instead of the data.
    x_lex = (
        x.reshape(B, D2, 2, H2, 2, W2, 2, C)
         .transpose(0, 1, 3, 5, 2, 4, 6, 7)     # (B, D2, H2, W2, pd, ph, pw, C)
         .reshape(M, C8)
    )

    # Permute parameters from module order to lexicographic order.
    seg = jnp.arange(C, dtype=jnp.int32)
    perm = jnp.concatenate([m * C + seg for m in _LEX_TO_MODULE])   # (8C,)
    w_lex = weight_t[perm]                                          # (8C, 2C)
    g_lex = gamma[perm]
    b_lex = beta[perm]

    # Fold LN affine into the matmul: (xn*g + b) @ W == xn @ (g[:,None]*W) + b @ W.
    w_fold = (g_lex[:, None].astype(jnp.float32)
              * w_lex.astype(jnp.float32)).astype(weight_t.dtype)   # (8C, 2C)
    bias = (b_lex.astype(jnp.float32)
            @ w_lex.astype(jnp.float32)).reshape(1, C2)             # (1, 2C) f32

    # --- Row tiling: big MXU-friendly tiles; pad rows instead of asserting.
    tm_eff = min(tm, _round_up(M, 8))
    M_pad = _round_up(M, tm_eff)
    if M_pad != M:
        x_lex = jnp.pad(x_lex, ((0, M_pad - M), (0, 0)))
    grid = (M_pad // tm_eff,)

    out = pl.pallas_call(
        _merge_kernel,
        out_shape=jax.ShapeDtypeStruct((M_pad, C2), x.dtype),
        grid_spec=pltpu.PrefetchScalarGridSpec(
            num_scalar_prefetch=0,
            grid=grid,
            in_specs=[
                pl.BlockSpec((tm_eff, C8), lambda i: (i, 0)),
                pl.BlockSpec((C8, C2), lambda i: (0, 0)),
                pl.BlockSpec((1, C2), lambda i: (0, 0)),
            ],
            out_specs=pl.BlockSpec((tm_eff, C2), lambda i: (i, 0)),
        ),
        compiler_params=pltpu.CompilerParams(
            dimension_semantics=("parallel",),
        ),
    )(x_lex, w_fold, bias)

    if M_pad != M:
        out = out[:M]
    return out.reshape(B, M // B, C2)


def _reference(x, input_resolution, weight_t, gamma, beta):
    """Pure-JAX reference with the original module ordering / two-pass LN."""
    B, N, C = x.shape
    D, H, W = input_resolution
    xg = x.reshape(B, D, H, W, C)
    parts = [
        xg[:, 0::2, 0::2, 0::2, :],
        xg[:, 1::2, 0::2, 0::2, :],
        xg[:, 0::2, 1::2, 0::2, :],
        xg[:, 0::2, 0::2, 1::2, :],
        xg[:, 1::2, 1::2, 0::2, :],
        xg[:, 1::2, 0::2, 1::2, :],
        xg[:, 0::2, 1::2, 1::2, :],
        xg[:, 1::2, 1::2, 1::2, :],
    ]
    xc = jnp.concatenate(parts, axis=-1).reshape(B, -1, 8 * C)
    mean = jnp.mean(xc, axis=-1, keepdims=True)
    var = jnp.mean((xc - mean) ** 2, axis=-1, keepdims=True)
    xn = (xc - mean) / jnp.sqrt(var + LN_EPS) * gamma + beta
    return jnp.einsum("bnk,ko->bno", xn, weight_t)


if __name__ == "__main__":
    key = jax.random.PRNGKey(0)
    k_x, k_w, k_g, k_b = jax.random.split(key, 4)

    # Small shapes consistent with the module: dim=C=64 (so 2C=128 lane-dense
    # output), D=H=W=8, B=2.
    B, C = 2, 64
    D, H, W = 8, 8, 8
    N = D * H * W

    x = jax.random.normal(k_x, (B, N, C), dtype=jnp.float32)

    # Parameters (shapes from the module's __init__):
    #   nn.Linear(8C, 2C, bias=False).weight : (2C, 8C) -> store transpose (8C, 2C)
    #   nn.LayerNorm(8C): weight (8C,), bias (8C,) -- use non-trivial values.
    weight_t = (
        jax.random.normal(k_w, (8 * C, 2 * C), dtype=jnp.float32)
        * (1.0 / jnp.sqrt(8.0 * C))
    )
    gamma = 1.0 + 0.1 * jax.random.normal(k_g, (8 * C,), dtype=jnp.float32)
    beta = 0.1 * jax.random.normal(k_b, (8 * C,), dtype=jnp.float32)

    ref = _reference(x, (D, H, W), weight_t, gamma, beta)

    # Default large tile (single grid step for this small shape).
    out = patch_merging_3d(x, (D, H, W), weight_t, gamma, beta)
    out = jax.block_until_ready(out)
    assert out.shape == (B, N // 8, 2 * C), out.shape
    assert jnp.allclose(out, ref, atol=1e-4, rtol=1e-4), "mismatch vs JAX reference"

    # Exercise the multi-step + row-padding path (M=128 rows, tm=48 -> pad to 144).
    out2 = patch_merging_3d(x, (D, H, W), weight_t, gamma, beta, tm=48)
    out2 = jax.block_until_ready(out2)
    assert jnp.allclose(out2, ref, atol=1e-4, rtol=1e-4), "mismatch (padded path)"

    print("KERNEL_OK")
</pallas_src>

<mosaic_0001>
module attributes {stable_mosaic.version = 11 : i64} {
  func.func @_merge_kernel(%arg0: i32, %arg1: memref<128x512xf32, #tpu.memory_space<vmem>>, %arg2: memref<512x128xf32, #tpu.memory_space<vmem>>, %arg3: memref<1x128xf32, #tpu.memory_space<vmem>>, %arg4: memref<128x128xf32, #tpu.memory_space<vmem>>) attributes {dimension_semantics = [#tpu.dimension_semantics<parallel>], iteration_bounds = array<i64: 1>, scalar_prefetch = 0 : i64, scratch_operands = 0 : i64, tpu.core_type = #tpu.core_type<tc>, window_params = [{transform_indices = @transform_0, window_bounds = array<i64: 128, 512>}, {pipeline_mode = #tpu.pipeline_mode<synchronous>, transform_indices = @transform_1, window_bounds = array<i64: 512, 128>}, {pipeline_mode = #tpu.pipeline_mode<synchronous>, transform_indices = @transform_2, window_bounds = array<i64: 1, 128>}, {transform_indices = @transform_3, window_bounds = array<i64: 128, 128>}]} {
    %c0 = arith.constant 0 : index
    %c0_0 = arith.constant 0 : index
    %0 = vector.load %arg1[%c0, %c0_0] : memref<128x512xf32, #tpu.memory_space<vmem>>, vector<128x512xf32>
    %cst = arith.constant dense<0.000000e+00> : vector<128xf32>
    %1 = vector.multi_reduction <add>, %0, %cst [1] : vector<128x512xf32> to vector<128xf32>
    %2 = vector.shape_cast %1 : vector<128xf32> to vector<128x1xf32>
    %cst_1 = arith.constant 5.120000e+02 : f32
    %3 = vector.broadcast %cst_1 : f32 to vector<128x1xf32>
    %4 = arith.divf %2, %3 : vector<128x1xf32>
    %5 = arith.mulf %0, %0 : vector<128x512xf32>
    %cst_2 = arith.constant dense<0.000000e+00> : vector<128xf32>
    %6 = vector.multi_reduction <add>, %5, %cst_2 [1] : vector<128x512xf32> to vector<128xf32>
    %7 = vector.shape_cast %6 : vector<128xf32> to vector<128x1xf32>
    %cst_3 = arith.constant 5.120000e+02 : f32
    %8 = vector.broadcast %cst_3 : f32 to vector<128x1xf32>
    %9 = arith.divf %7, %8 : vector<128x1xf32>
    %10 = arith.mulf %4, %4 : vector<128x1xf32>
    %11 = arith.subf %9, %10 : vector<128x1xf32>
    %12 = vector.broadcast %4 : vector<128x1xf32> to vector<128x512xf32>
    %13 = arith.subf %0, %12 : vector<128x512xf32>
    %cst_4 = arith.constant 9.99999974E-6 : f32
    %14 = vector.broadcast %cst_4 : f32 to vector<128x1xf32>
    %15 = arith.addf %11, %14 : vector<128x1xf32>
    %16 = math.rsqrt %15 : vector<128x1xf32>
    %17 = vector.broadcast %16 : vector<128x1xf32> to vector<128x512xf32>
    %18 = arith.mulf %13, %17 : vector<128x512xf32>
    %c0_5 = arith.constant 0 : index
    %c0_6 = arith.constant 0 : index
    %19 = vector.load %arg2[%c0_5, %c0_6] : memref<512x128xf32, #tpu.memory_space<vmem>>, vector<512x128xf32>
    %cst_7 = arith.constant dense<0.000000e+00> : vector<128x128xf32>
    %20 = tpu.matmul %18, %19, %cst_7 {dimension_numbers = #tpu.dot_dimension_numbers<[1], [0], [0], [1], [0, 0, 1, 1], [], []>} : vector<128x512xf32>, vector<512x128xf32>, vector<128x128xf32> -> vector<128x128xf32>
    %c0_8 = arith.constant 0 : index
    %c0_9 = arith.constant 0 : index
    %21 = vector.load %arg3[%c0_8, %c0_9] : memref<1x128xf32, #tpu.memory_space<vmem>>, vector<1x128xf32>
    %22 = vector.broadcast %21 : vector<1x128xf32> to vector<128x128xf32>
    %23 = arith.addf %20, %22 : vector<128x128xf32>
    %c0_10 = arith.constant 0 : index
    %c0_11 = arith.constant 0 : index
    %24 = vector.load %arg4[%c0_10, %c0_11] : memref<128x128xf32, #tpu.memory_space<vmem>>, vector<128x128xf32>
    tpu.vector_store %arg4[%c0_10, %c0_11], %23 {strides = array<i32>} : memref<128x128xf32, #tpu.memory_space<vmem>>, vector<128x128xf32>,
    return
  }
  func.func @transform_0(%arg0: i32) -> (i32, i32) {
    %c0_i32 = arith.constant 0 : i32
    %c0_i32_0 = arith.constant 0 : i32
    return %arg0, %c0_i32 : i32, i32
  }
  func.func @transform_1(%arg0: i32) -> (i32, i32) {
    %c0_i32 = arith.constant 0 : i32
    %c0_i32_0 = arith.constant 0 : i32
    %c0_i32_1 = arith.constant 0 : i32
    return %c0_i32, %c0_i32_0 : i32, i32
  }
  func.func @transform_2(%arg0: i32) -> (i32, i32) {
    %c0_i32 = arith.constant 0 : i32
    %c0_i32_0 = arith.constant 0 : i32
    %c0_i32_1 = arith.constant 0 : i32
    return %c0_i32, %c0_i32_0 : i32, i32
  }
  func.func @transform_3(%arg0: i32) -> (i32, i32) {
    %c0_i32 = arith.constant 0 : i32
    %c0_i32_0 = arith.constant 0 : i32
    return %arg0, %c0_i32 : i32, i32
  }
}

</mosaic_0001>

<bundles_post_ra>
// kernel: tpu_custom_call.1
= control target key start
LH: loop header
LB: loop body
LE: loop exit
PB: predicated region body
PF: predicated region fallthrough
CT: control target
= control target key end

     0   :  { %8 = vsyncpa [#allocation3], 0  ;;  %s1750_s0 = inlined_call_operand.hbm [shape: f32[128,512], index: 0, kind: input, shape index: {}]   ;;  %s1751_s1 = inlined_call_operand.hbm [shape: f32[512,128], index: 1, kind: input, shape index: {}]   ;;  %s1752_s2 = inlined_call_operand.vmem [shape: f32[1,128], index: 2, kind: input, shape index: {}]   ;;  %s1753_s3 = inlined_call_operand.hbm [shape: f32[128,128], index: 3, kind: output, shape index: {}]  }
   0x1   :  { %9 = vsyncpa [#allocation6], 0 }
   0x2   :  { %10 = vsyncpa [#allocation4], 0  ;;  %s15_s14 = sshll.u32 %s1750_s0, 4  ;;  %s1249_s15 = smov [#allocation2]   ;;  %s16_s14 = int_to_ptr.hbm [resolvable:$true] %s15_s14 }
   0x3   :  { %s17_s16 = sshll.u32 %s1249_s15, 4  ;;  %s28_s19 = sshll.u32 %s1751_s1, 4  ;;  %s18_s16 = int_to_ptr.vmem [resolvable:$true] %s17_s16  ;;  %s29_s19 = int_to_ptr.hbm [resolvable:$true] %s28_s19 }
   0x4   :  { %s1250_s20 = smov 512   ;;  %s1251_s21 = smov 32  }
   0x5   :  { %23 = dma.hbm_to_vmem [thread:$0]  %s16_s14, 8192, %s18_s16, [#allocation3], %s1250_s20, %s1250_s20, %s1251_s21  }
   0x6   :  { %s1252_s22 = smov [#allocation5]   ;;  %s1253_s24 = smov 128  }
   0x7   :  { %s30_s23 = sshll.u32 %s1252_s22, 4  ;;  %s1254_s25 = smov 8   ;;  %s31_s23 = int_to_ptr.vmem [resolvable:$true] %s30_s23 }
   0x8   :  { %36 = dma.hbm_to_vmem [thread:$0]  %s29_s19, 8192, %s31_s23, [#allocation6], %s1253_s24, %s1253_s24, %s1254_s25  }
   0x9   :  { %1243 = dma.done.wait [#allocation3], 8192  }
   0xa   :  { %1244 = vsyncadd [#allocation3], 4294959104 }
   0xb   :  { %1245 = dma.done.wait [#allocation6], 8192  }
   0xc   :  { %1246 = vsyncadd [#allocation6], 4294959104  ;;  %v55_v0 = vld [vmem:[#allocation2 + $0x40] sm:$0xff]  ;;  %v56_v1 = vld [vmem:[#allocation2 + $0x48] sm:$0xff]  ;;  %s1060_s29 = sshll.u32 %s1753_s3, 4  ;;  %s1061_s29 = int_to_ptr.hbm [resolvable:$true] %s1060_s29 }
   0xd   :  { %v57_v2 = vld [vmem:[#allocation2 + $0x50] sm:$0xff]  ;;  %v121_v3 = vadd.f32 %v56_v1, %v55_v0  ;;  %v1286_v4 = vld [vmem:[#allocation2 + $0x20] sm:$0xff]  ;;  %v1288_v5 = vld [vmem:[#allocation2 + $0x28] sm:$0xff]  ;;  %v222_v6 = vmul.f32 %v55_v0, %v55_v0  ;;  %v223_v7 = vmul.f32 %v56_v1, %v56_v1 }
   0xe   :  { %v58_v8 = vld [vmem:[#allocation2 + $0x58] sm:$0xff]  ;;  %v1290_v9 = vld [vmem:[#allocation2 + $0x30] sm:$0xff]  ;;  %v116_v10 = vadd.f32 %v1288_v5, %v1286_v4  ;;  %v1294_v11 = vld [vmem:[#allocation2] sm:$0xff]  ;;  %v218_v12 = vmul.f32 %v1286_v4, %v1286_v4  ;;  %v219_v13 = vmul.f32 %v1288_v5, %v1288_v5  ;;  %v224_v18 = vmul.f32 %v57_v2, %v57_v2 }
   0xf   :  { %v122_v14 = vadd.f32 %v121_v3, %v57_v2  ;;  %v1300_v15 = vld [vmem:[#allocation2 + $0x38] sm:$0xff]  ;;  %v1302_v16 = vld [vmem:[#allocation2 + $0x8] sm:$0xff]  ;;  %v1304_v17 = vld [vmem:[#allocation2 + $0x10] sm:$0xff]  ;;  %v288_v19 = vadd.f32 %v223_v7, %v222_v6  ;;  %v220_v20 = vmul.f32 %v1290_v9, %v1290_v9  ;;  %v214_v24 = vmul.f32 %v1294_v11, %v1294_v11 }
  0x10   :  { %v117_v21 = vadd.f32 %v116_v10, %v1290_v9  ;;  %v111_v22 = vadd.f32 %v1302_v16, %v1294_v11  ;;  %v283_v23 = vadd.f32 %v219_v13, %v218_v12  ;;  %v1313_v26 = vld [vmem:[#allocation2 + $0x18] sm:$0xff]  ;;  %v215_v27 = vmul.f32 %v1302_v16, %v1302_v16  ;;  %v59_v28 = vld [vmem:[#allocation2 + $0x60] sm:$0xff]  ;;  %v60_v29 = vld [vmem:[#allocation2 + $0x68] sm:$0xff] }
  0x11   :  { %v123_v25 = vadd.f32 %v122_v14, %v58_v8  ;;  %v216_v32 = vmul.f32 %v1304_v17, %v1304_v17  ;;  %v225_v33 = vmul.f32 %v58_v8, %v58_v8  ;;  %v289_v34 = vadd.f32 %v288_v19, %v224_v18  ;;  %v63_v41 = vld [vmem:[#allocation2 + $0x80] sm:$0xff]  ;;  %v64_v42 = vld [vmem:[#allocation2 + $0x88] sm:$0xff]  ;;  %v1324_v43 = vld [vmem:[#allocation2 + $0x70] sm:$0xff] }
  0x12   :  { %v118_v30 = vadd.f32 %v117_v21, %v1300_v15  ;;  %v112_v31 = vadd.f32 %v111_v22, %v1304_v17  ;;  %v221_v35 = vmul.f32 %v1300_v15, %v1300_v15  ;;  %v278_v36 = vadd.f32 %v215_v27, %v214_v24  ;;  %v65_v51 = vld [vmem:[#allocation2 + $0x90] sm:$0xff]  ;;  %v67_v52 = vld [vmem:[#allocation2 + $0xa0] sm:$0xff]  ;;  %v68_v53 = vld [vmem:[#allocation2 + $0xa8] sm:$0xff] }
  0x13   :  { %124 = vadd.xlane.f32.xlu2 %v123_v25  ;;  %v284_v38 = vadd.f32 %v283_v23, %v220_v20  ;;  %v226_v39 = vmul.f32 %v59_v28, %v59_v28  ;;  %v227_v40 = vmul.f32 %v60_v29, %v60_v29  ;;  %v217_v44 = vmul.f32 %v1313_v26, %v1313_v26  ;;  %v1330_v54 = vld [vmem:[#allocation2 + $0x78] sm:$0xff]  ;;  %v69_v63 = vld [vmem:[#allocation2 + $0xb0] sm:$0xff]  ;;  %v71_v13 = vld [vmem:[#allocation2 + $0xc0] sm:$0xff] }
  0x14   :  { %119 = vadd.xlane.f32.xlu1 %v118_v30  ;;  %v113_v37 = vadd.f32 %v112_v31, %v1313_v26  ;;  %v279_v45 = vadd.f32 %v278_v36, %v216_v32  ;;  %v290_v46 = vadd.f32 %v289_v34, %v225_v33  ;;  %v131_v47 = vadd.f32 %v64_v42, %v63_v41  ;;  %v66_v62 = vld [vmem:[#allocation2 + $0x98] sm:$0xff]  ;;  %v72_v14 = vld [vmem:[#allocation2 + $0xc8] sm:$0xff]  ;;  %v75_v27 = vld [vmem:[#allocation2 + $0xe0] sm:$0xff] }
  0x15   :  { %v285_v48 = vadd.f32 %v284_v38, %v221_v35  ;;  %v228_v49 = vmul.f32 %v1324_v43, %v1324_v43  ;;  %v293_v50 = vadd.f32 %v227_v40, %v226_v39  ;;  %v126_v56 = vadd.f32 %v60_v29, %v59_v28  ;;  %v70_v10 = vld [vmem:[#allocation2 + $0xb8] sm:$0xff]  ;;  %v76_v28 = vld [vmem:[#allocation2 + $0xe8] sm:$0xff]  ;;  %v73_v29 = vld [vmem:[#allocation2 + $0xd0] sm:$0xff] }
  0x16   :  { %114 = vadd.xlane.f32.xlu0 %v113_v37  ;;  %v280_v55 = vadd.f32 %v279_v45, %v217_v44  ;;  %v132_v57 = vadd.f32 %v131_v47, %v65_v51  ;;  %v234_v58 = vmul.f32 %v67_v52, %v67_v52  ;;  %v235_v59 = vmul.f32 %v68_v53, %v68_v53  ;;  %v77_v37 = vld [vmem:[#allocation2 + $0xf0] sm:$0xff]  ;;  %v79_v38 = vld [vmem:[#allocation2 + $0x100] sm:$0xff]  ;;  %v80_v39 = vld [vmem:[#allocation2 + $0x108] sm:$0xff] }
  0x17   :  { %v229_v60 = vmul.f32 %v1330_v54, %v1330_v54  ;;  %v294_v61 = vadd.f32 %v293_v50, %v228_v49  ;;  %v127_v0 = vadd.f32 %v126_v56, %v1324_v43  ;;  %v230_v1 = vmul.f32 %v63_v41, %v63_v41  ;;  %v74_v40 = vld [vmem:[#allocation2 + $0xd8] sm:$0xff]  ;;  %v81_v50 = vld [vmem:[#allocation2 + $0x110] sm:$0xff] }
  0x18   :  { %v231_v2 = vmul.f32 %v64_v42, %v64_v42  ;;  %v133_v3 = vadd.f32 %v132_v57, %v66_v62  ;;  %v236_v6 = vmul.f32 %v69_v63, %v69_v63  ;;  %v303_v7 = vadd.f32 %v235_v59, %v234_v58  ;;  %v78_v49 = vld [vmem:[#allocation2 + $0xf8] sm:$0xff] }
  0x19   :  { %v295_v8 = vadd.f32 %v294_v61, %v229_v60  ;;  %v136_v12 = vadd.f32 %v68_v53, %v67_v52  ;;  %v128_v18 = vadd.f32 %v127_v0, %v1330_v54  ;;  %v232_v19 = vmul.f32 %v65_v51, %v65_v51  ;;  %v82_v59 = vld [vmem:[#allocation2 + $0x118] sm:$0xff]  ;;  %v83_v61 = vld [vmem:[#allocation2 + $0x120] sm:$0xff] }
  0x1a   :  { %v298_v20 = vadd.f32 %v231_v2, %v230_v1  ;;  %v237_v21 = vmul.f32 %v70_v10, %v70_v10  ;;  %v304_v22 = vadd.f32 %v303_v7, %v236_v6  ;;  %v238_v24 = vmul.f32 %v71_v13, %v71_v13 }
  0x1b   :  { %291 = vadd.xlane.f32.xlu2 %v290_v46  ;;  %v137_v23 = vadd.f32 %v136_v12, %v69_v63  ;;  %v239_v25 = vmul.f32 %v72_v14, %v72_v14  ;;  %v233_v30 = vmul.f32 %v66_v62, %v66_v62  ;;  %v146_v33 = vadd.f32 %v76_v28, %v75_v27  ;;  %v84_v62 = vld [vmem:[#allocation2 + $0x128] sm:$0xff] }
  0x1c   :  { %286 = vadd.xlane.f32.xlu1 %v285_v48  ;;  %v299_v31 = vadd.f32 %v298_v20, %v232_v19  ;;  %v305_v32 = vadd.f32 %v304_v22, %v237_v21  ;;  %v240_v35 = vmul.f32 %v73_v29, %v73_v29  ;;  %v141_v42 = vadd.f32 %v72_v14, %v71_v13  ;;  %v88_v12 = vld [vmem:[#allocation2 + $0x148] sm:$0xff]  ;;  %v85_v13 = vld [vmem:[#allocation2 + $0x130] sm:$0xff] }
  0x1d   :  { %v138_v34 = vadd.f32 %v137_v23, %v70_v10  ;;  %v308_v36 = vadd.f32 %v239_v25, %v238_v24  ;;  %v147_v44 = vadd.f32 %v146_v33, %v77_v37  ;;  %v246_v45 = vmul.f32 %v79_v38, %v79_v38  ;;  %v87_v10 = vld [vmem:[#allocation2 + $0x140] sm:$0xff]  ;;  %v89_v24 = vld [vmem:[#allocation2 + $0x150] sm:$0xff] }
  0x1e   :  { %281 = vadd.xlane.f32.xlu0 %v280_v55  ;;  %v300_v41 = vadd.f32 %v299_v31, %v233_v30  ;;  %v247_v46 = vmul.f32 %v80_v39, %v80_v39  ;;  %v241_v47 = vmul.f32 %v74_v40, %v74_v40  ;;  %v142_v51 = vadd.f32 %v141_v42, %v73_v29  ;;  %v91_v25 = vld [vmem:[#allocation2 + $0x160] sm:$0xff] }
  0x1f   :  { %v309_v48 = vadd.f32 %v308_v36, %v240_v35  ;;  %v242_v52 = vmul.f32 %v75_v27, %v75_v27  ;;  %v243_v53 = vmul.f32 %v76_v28, %v76_v28  ;;  %v148_v55 = vadd.f32 %v147_v44, %v78_v49  ;;  %v92_v27 = vld [vmem:[#allocation2 + $0x168] sm:$0xff]  ;;  %v86_v28 = vld [vmem:[#allocation2 + $0x138] sm:$0xff] }
  0x20   :  { %v248_v56 = vmul.f32 %v81_v50, %v81_v50  ;;  %v318_v57 = vadd.f32 %v247_v46, %v246_v45  ;;  %v151_v60 = vadd.f32 %v80_v39, %v79_v38  ;;  %v143_v63 = vadd.f32 %v142_v51, %v74_v40  ;;  %v90_v36 = vld [vmem:[#allocation2 + $0x158] sm:$0xff] }
  0x21   :  { %v310_v58 = vadd.f32 %v309_v48, %v241_v47  ;;  %v244_v0 = vmul.f32 %v77_v37, %v77_v37  ;;  %v313_v1 = vadd.f32 %v243_v53, %v242_v52  ;;  %v249_v2 = vmul.f32 %v82_v59, %v82_v59  ;;  %v93_v37 = vld [vmem:[#allocation2 + $0x170] sm:$0xff]  ;;  %v94_v46 = vld [vmem:[#allocation2 + $0x178] sm:$0xff]  ;;  %v95_v48 = vld [vmem:[#allocation2 + $0x180] sm:$0xff] }
  0x22   :  { %v152_v6 = vadd.f32 %v151_v60, %v81_v50  ;;  %v250_v7 = vmul.f32 %v83_v61, %v83_v61  ;;  %v245_v14 = vmul.f32 %v78_v49, %v78_v49  ;;  %v161_v20 = vadd.f32 %v88_v12, %v87_v10  ;;  %v96_v49 = vld [vmem:[#allocation2 + $0x188] sm:$0xff] }
  0x23   :  { %134 = vadd.xlane.f32.xlu2 %v133_v3  ;;  %v319_v3 = vadd.f32 %v318_v57, %v248_v56  ;;  %v252_v22 = vmul.f32 %v85_v13, %v85_v13  ;;  %v156_v30 = vadd.f32 %v84_v62, %v83_v61  ;;  %v259_v33 = vmul.f32 %v92_v27, %v92_v27  ;;  %v100_v60 = vld [vmem:[#allocation2 + $0x1a8] sm:$0xff]  ;;  %v97_v61 = vld [vmem:[#allocation2 + $0x190] sm:$0xff] }
  0x24   :  { %296 = vadd.xlane.f32.xlu1 %v295_v8  ;;  %v251_v8 = vmul.f32 %v84_v62, %v84_v62  ;;  %v153_v21 = vadd.f32 %v152_v6, %v82_v59  ;;  %v162_v31 = vadd.f32 %v161_v20, %v89_v24  ;;  %v254_v39 = vmul.f32 %v87_v10, %v87_v10  ;;  %v99_v59 = vld [vmem:[#allocation2 + $0x1a0] sm:$0xff]  ;;  %v104_v10 = vld [vmem:[#allocation2 + $0x1c8] sm:$0xff] }
  0x25   :  { %v320_v19 = vadd.f32 %v319_v3, %v249_v2  ;;  %v157_v38 = vadd.f32 %v156_v30, %v85_v13  ;;  %v255_v40 = vmul.f32 %v88_v12, %v88_v12  ;;  %v260_v42 = vmul.f32 %v93_v37, %v93_v37  ;;  %v98_v12 = vld [vmem:[#allocation2 + $0x198] sm:$0xff] }
  0x26   :  { %129 = vadd.xlane.f32.xlu0 %v128_v18  ;;  %v314_v18 = vadd.f32 %v313_v1, %v244_v0  ;;  %v323_v23 = vadd.f32 %v251_v8, %v250_v7  ;;  %v166_v47 = vadd.f32 %v92_v27, %v91_v25  ;;  %v256_v51 = vmul.f32 %v89_v24, %v89_v24  ;;  %v101_v7 = vld [vmem:[#allocation2 + $0x1b0] sm:$0xff]  ;;  %v103_v8 = vld [vmem:[#allocation2 + $0x1c0] sm:$0xff] }
  0x27   :  { %v158_v50 = vadd.f32 %v157_v38, %v86_v28  ;;  %v328_v52 = vadd.f32 %v255_v40, %v254_v39  ;;  %v261_v53 = vmul.f32 %v94_v46, %v94_v46  ;;  %v262_v57 = vmul.f32 %v95_v48, %v95_v48  ;;  %v105_v24 = vld [vmem:[#allocation2 + $0x1d0] sm:$0xff] }
  0x28   :  { %v315_v29 = vadd.f32 %v314_v18, %v245_v14  ;;  %v324_v35 = vadd.f32 %v323_v23, %v252_v22  ;;  %v167_v56 = vadd.f32 %v166_v47, %v93_v37  ;;  %v257_v62 = vmul.f32 %v90_v36, %v90_v36  ;;  %v102_v23 = vld [vmem:[#allocation2 + $0x1b8] sm:$0xff] }
  0x29   :  { %v176_v1 = vadd.f32 %v100_v60, %v99_v59  ;;  %v264_v3 = vmul.f32 %v97_v61, %v97_v61  ;;  %v171_v14 = vadd.f32 %v96_v49, %v95_v48  ;;  %v271_v20 = vmul.f32 %v104_v10, %v104_v10 }
  0x2a   :  { %v168_v2 = vadd.f32 %v167_v56, %v94_v46  ;;  %v266_v27 = vmul.f32 %v99_v59, %v99_v59  ;;  %v272_v30 = vmul.f32 %v105_v24, %v105_v24  ;;  %v268_v38 = vmul.f32 %v101_v7, %v101_v7  ;;  %v109_v46 = vld [vmem:[#allocation2 + $0x1f0] sm:$0xff] }
  0x2b   :  { %306 = vadd.xlane.f32.xlu2 %v305_v32  ;;  %v258_v32 = vmul.f32 %v91_v25, %v91_v25  ;;  %v177_v18 = vadd.f32 %v176_v1, %v101_v7  ;;  %v172_v25 = vadd.f32 %v171_v14, %v97_v61  ;;  %v269_v47 = vmul.f32 %v102_v23, %v102_v23  ;;  %v773_v1 = vld [vmem:[#allocation5 + $0x1f8] sm:$0xff]  ;;  %v772_v7 = vld [vmem:[#allocation5 + $0x1f0] sm:$0xff] }
  0x2c   :  { %139 = vadd.xlane.f32.xlu1 %v138_v34  ;;  %v253_v34 = vmul.f32 %v86_v28, %v86_v28  ;;  %v267_v28 = vmul.f32 %v100_v60, %v100_v60  ;;  %973 = vmatpush.msra.mxu3 %v773_v1  ;;  %v1255_v14 = vmov 512.0   ;;  %v761_v1 = vld [vmem:[#allocation5 + $0x198] sm:$0xff] }
  0x2d   :  { %v333_v44 = vadd.f32 %v259_v33, %v258_v32  ;;  %v106_v33 = vld [vmem:[#allocation2 + $0x1d8] sm:$0xff]  ;;  %v173_v37 = vadd.f32 %v172_v25, %v98_v12  ;;  %1083 = vrcp.f32 %v1255_v14  ;;  %v727_v14 = vld [vmem:[#allocation5 + $0x88] sm:$0xff] }
  0x2e   :  { %301 = vadd.xlane.f32.xlu0 %v300_v41  ;;  %v163_v41 = vadd.f32 %v162_v31, %v90_v36  ;;  %v325_v45 = vadd.f32 %v324_v35, %v253_v34  ;;  %v181_v34 = vadd.f32 %v104_v10, %v103_v8  ;;  %v107_v35 = vld [vmem:[#allocation2 + $0x1e0] sm:$0xff]  ;;  %v108_v36 = vld [vmem:[#allocation2 + $0x1e8] sm:$0xff]  ;;  %v343_v39 = vadd.f32 %v267_v28, %v266_v27  ;;  %v769_v27 = vld [vmem:[#allocation5 + $0x1d8] sm:$0xff] }
  0x2f   :  { %v273_v40 = vmul.f32 %v106_v33, %v106_v33  ;;  %v186_v56 = vadd.f32 %v108_v36, %v107_v35  ;;  %v739_v10 = vld [vmem:[#allocation5 + $0xe8] sm:$0xff]  ;;  %974 = vmatpush.msra.mxu3 %v772_v7  ;;  %v720_v28 = vld [vmem:[#allocation5 + $0x50] sm:$0xff] }
  0x30   :  { %v344_v48 = vadd.f32 %v343_v39, %v268_v38  ;;  %v734_v38 = vld [vmem:[#allocation5 + $0xc0] sm:$0xff]  ;;  %v744_v7 = vld [vmem:[#allocation5 + $0x110] sm:$0xff] }
  0x31   :  { %v187_v59 = vadd.f32 %v186_v56, %v109_v46  ;;  %v750_v39 = vld [vmem:[#allocation5 + $0x140] sm:$0xff]  ;;  %v763_v56 = vld [vmem:[#allocation5 + $0x1a8] sm:$0xff] }
  0x33   :  { %149 = vadd.xlane.f32.xlu2 %v148_v55  ;;  %v334_v55 = vadd.f32 %v333_v44, %v260_v42  ;;  %v182_v42 = vadd.f32 %v181_v34, %v105_v24  ;;  %v274_v44 = vmul.f32 %v107_v35, %v107_v35  ;;  %v753_v24 = vld [vmem:[#allocation5 + $0x158] sm:$0xff]  ;;  %v1336_v25 = vpop.eup %1083  ;;  %v735_v34 = vld [vmem:[#allocation5 + $0xc8] sm:$0xff] }
  0x34   :  { %311 = vadd.xlane.f32.xlu1 %v310_v58  ;;  %v263_v58 = vmul.f32 %v96_v49, %v96_v49  ;;  %v751_v35 = vld [vmem:[#allocation5 + $0x148] sm:$0xff]  ;;  %vm196_vm0 = vweird.f32 %v1336_v25 }
  0x35   :  { %v335_v0 = vadd.f32 %v334_v55, %v261_v53  ;;  %v110_v53 = vld [vmem:[#allocation2 + $0x1f8] sm:$0xff]  ;;  %v345_v55 = vadd.f32 %v344_v48, %v269_v47  ;;  %v716_v47 = vld [vmem:[#allocation5 + $0x30] sm:$0xff] }
  0x36   :  { %144 = vadd.xlane.f32.xlu0 %v143_v63  ;;  %v329_v63 = vadd.f32 %v328_v52, %v256_v51  ;;  %v338_v6 = vadd.f32 %v263_v58, %v262_v57  ;;  %v276_v51 = vmul.f32 %v109_v46, %v109_v46  ;;  %v277_v57 = vmul.f32 %v110_v53, %v110_v53  ;;  %v765_v46 = vld [vmem:[#allocation5 + $0x1b8] sm:$0xff]  ;;  %v732_v48 = vld [vmem:[#allocation5 + $0xb0] sm:$0xff] }
  0x37   :  { %v188_v61 = vadd.f32 %v187_v59, %v110_v53  ;;  %v731_v53 = vld [vmem:[#allocation5 + $0xa8] sm:$0xff]  ;;  %v746_v59 = vld [vmem:[#allocation5 + $0x120] sm:$0xff] }
  0x38   :  { %v330_v13 = vadd.f32 %v329_v63, %v257_v62  ;;  %v339_v22 = vadd.f32 %v338_v6, %v264_v3  ;;  %v725_v62 = vld [vmem:[#allocation5 + $0x78] sm:$0xff]  ;;  %v740_v3 = vld [vmem:[#allocation5 + $0xf0] sm:$0xff] }
  0x39   :  { %v741_v63 = vld [vmem:[#allocation5 + $0xf8] sm:$0xff]  ;;  %778 = vmatpush.msra.mxu0 %v725_v62  ;;  %v756_v6 = vld [vmem:[#allocation5 + $0x170] sm:$0xff] }
  0x3a   :  { %843 = vmatpush.msra.mxu1 %v741_v63  ;;  %v713_v62 = vld [vmem:[#allocation5 + $0x18] sm:$0xff] }
  0x3b   :  { %321 = vadd.xlane.f32.xlu2 %v320_v19  ;;  %v270_v19 = vmul.f32 %v103_v8, %v103_v8  ;;  %v723_v8 = vld [vmem:[#allocation5 + $0x68] sm:$0xff]  ;;  %v729_v63 = vld [vmem:[#allocation5 + $0x98] sm:$0xff] }
  0x3c   :  { %154 = vadd.xlane.f32.xlu1 %v153_v21  ;;  %v265_v21 = vmul.f32 %v98_v12, %v98_v12  ;;  %844 = vmatpush.msra.mxu1 %v740_v3  ;;  %v755_v12 = vld [vmem:[#allocation5 + $0x168] sm:$0xff]  ;;  %v712_v3 = vld [vmem:[#allocation5 + $0x10] sm:$0xff] }
  0x3d   :  { %v348_v31 = vadd.f32 %v271_v20, %v270_v19  ;;  %v738_v19 = vld [vmem:[#allocation5 + $0xe0] sm:$0xff] }
  0x3e   :  { %316 = vadd.xlane.f32.xlu0 %v315_v29  ;;  %v178_v29 = vadd.f32 %v177_v18, %v102_v23  ;;  %v340_v32 = vadd.f32 %v339_v22, %v265_v21  ;;  %845 = vmatpush.msra.mxu1 %v739_v10  ;;  %v722_v18 = vld [vmem:[#allocation5 + $0x60] sm:$0xff]  ;;  %v721_v22 = vld [vmem:[#allocation5 + $0x58] sm:$0xff]  ;;  %v760_v10 = vld [vmem:[#allocation5 + $0x190] sm:$0xff] }
  0x3f   :  { %v754_v20 = vld [vmem:[#allocation5 + $0x160] sm:$0xff]  ;;  %v737_v23 = vld [vmem:[#allocation5 + $0xd8] sm:$0xff] }
  0x40   :  { %846 = vmatpush.msra.mxu1 %v738_v19  ;;  %v770_v21 = vld [vmem:[#allocation5 + $0x1e0] sm:$0xff] }
  0x42   :  { %847 = vmatpush.msra.mxu1 %v737_v23  ;;  %v710_v23 = vld [vmem:[#allocation5] sm:$0xff] }
  0x43   :  { %164 = vadd.xlane.f32.xlu2 %v163_v41  ;;  %v349_v41 = vadd.f32 %v348_v31, %v272_v30  ;;  %v752_v30 = vld [vmem:[#allocation5 + $0x150] sm:$0xff] }
  0x44   :  { %326 = vadd.xlane.f32.xlu1 %v325_v45  ;;  %v275_v45 = vmul.f32 %v108_v36, %v108_v36  ;;  %v768_v31 = vld [vmem:[#allocation5 + $0x1d0] sm:$0xff]  ;;  %v767_v36 = vld [vmem:[#allocation5 + $0x1c8] sm:$0xff] }
  0x45   :  { %v350_v49 = vadd.f32 %v349_v41, %v273_v40  ;;  %v766_v40 = vld [vmem:[#allocation5 + $0x1c0] sm:$0xff] }
  0x46   :  { %159 = vadd.xlane.f32.xlu0 %v158_v50  ;;  %v183_v50 = vadd.f32 %v182_v42, %v106_v33  ;;  %v353_v52 = vadd.f32 %v275_v45, %v274_v44  ;;  %v719_v33 = vld [vmem:[#allocation5 + $0x48] sm:$0xff]  ;;  %v717_v42 = vld [vmem:[#allocation5 + $0x38] sm:$0xff] }
  0x47   :  { %v733_v44 = vld [vmem:[#allocation5 + $0xb8] sm:$0xff] }
  0x48   :  { %v354_v58 = vadd.f32 %v353_v52, %v276_v51  ;;  %v749_v45 = vld [vmem:[#allocation5 + $0x138] sm:$0xff]  ;;  %v715_v52 = vld [vmem:[#allocation5 + $0x28] sm:$0xff] }
  0x4a   :  { %v355_v60 = vadd.f32 %v354_v58, %v277_v57  ;;  %v714_v57 = vld [vmem:[#allocation5 + $0x20] sm:$0xff] }
  0x4b   :  { %336 = vadd.xlane.f32.xlu2 %v335_v0  ;;  %v757_v0 = vld [vmem:[#allocation5 + $0x178] sm:$0xff]  ;;  %v730_v58 = vld [vmem:[#allocation5 + $0xa0] sm:$0xff] }
  0x4c   :  { %169 = vadd.xlane.f32.xlu1 %v168_v2  ;;  %v724_v2 = vld [vmem:[#allocation5 + $0x70] sm:$0xff]  ;;  %908 = vmatpush.msra.mxu2 %v757_v0  ;;  %v745_v0 = vld [vmem:[#allocation5 + $0x118] sm:$0xff] }
  0x4d   :  { %779 = vmatpush.msra.mxu0 %v724_v2 }
  0x4e   :  { %331 = vadd.xlane.f32.xlu0 %v330_v13  ;;  %v771_v13 = vld [vmem:[#allocation5 + $0x1e8] sm:$0xff]  ;;  %909 = vmatpush.msra.mxu2 %v756_v6  ;;  %v728_v6 = vld [vmem:[#allocation5 + $0x90] sm:$0xff] }
  0x4f   :  { %780 = vmatpush.msra.mxu0 %v723_v8  ;;  %975 = vmatpush.msra.mxu3 %v771_v13  ;;  %v711_v13 = vld [vmem:[#allocation5 + $0x8] sm:$0xff] }
  0x50   :  { %910 = vmatpush.msra.mxu2 %v755_v12 }
  0x51   :  { %781 = vmatpush.msra.mxu0 %v722_v18  ;;  %976 = vmatpush.msra.mxu3 %v770_v21  ;;  %v743_v18 = vld [vmem:[#allocation5 + $0x108] sm:$0xff] }
  0x52   :  { %911 = vmatpush.msra.mxu2 %v754_v20  ;;  %v759_v21 = vld [vmem:[#allocation5 + $0x188] sm:$0xff] }
  0x53   :  { %179 = vadd.xlane.f32.xlu2 %v178_v29  ;;  %782 = vmatpush.msra.mxu0 %v721_v22  ;;  %v736_v29 = vld [vmem:[#allocation5 + $0xd0] sm:$0xff] }
  0x54   :  { %341 = vadd.xlane.f32.xlu1 %v340_v32  ;;  %912 = vmatpush.msra.mxu2 %v753_v24  ;;  %v192_v32 = vmul.f32 512.0, %v1336_v25  ;;  %v726_v24 = vld [vmem:[#allocation5 + $0x80] sm:$0xff] }
  0x55   :  { %977 = vmatpush.msra.mxu3 %v769_v27  ;;  %783 = vmatpush.msra.mxu0 %v720_v28  ;;  %v758_v27 = vld [vmem:[#allocation5 + $0x180] sm:$0xff] }
  0x56   :  { %174 = vadd.xlane.f32.xlu0 %v173_v37  ;;  %848 = vmatpush.msra.mxu1 %v736_v29  ;;  %v718_v37 = vld [vmem:[#allocation5 + $0x40] sm:$0xff]  ;;  %v193_v41 = vsub.f32 1.0, %v192_v32 }
  0x57   :  { %913 = vmatpush.msra.mxu2 %v752_v30  ;;  %978 = vmatpush.msra.mxu3 %v768_v31 }
  0x58   :  { %784 = vmatpush.msra.mxu0 %v719_v33  ;;  %849 = vmatpush.msra.mxu1 %v735_v34  ;;  %v194_v51 = vmul.f32 %v1336_v25, %v193_v41 }
  0x59   :  { %914 = vmatpush.msra.mxu2 %v751_v35  ;;  %979 = vmatpush.msra.mxu3 %v767_v36 }
  0x5a   :  { %785 = vmatpush.msra.mxu0 %v718_v37  ;;  %850 = vmatpush.msra.mxu1 %v734_v38 }
  0x5b   :  { %351 = vadd.xlane.f32.xlu2 %v350_v49  ;;  %915 = vmatpush.msra.mxu2 %v750_v39  ;;  %v748_v49 = vld [vmem:[#allocation5 + $0x130] sm:$0xff] }
  0x5c   :  { %184 = vadd.xlane.f32.xlu1 %v183_v50  ;;  %980 = vmatpush.msra.mxu3 %v766_v40  ;;  %v764_v50 = vld [vmem:[#allocation5 + $0x1b0] sm:$0xff] }
  0x5d   :  { %786 = vmatpush.msra.mxu0 %v717_v42  ;;  %851 = vmatpush.msra.mxu1 %v733_v44 }
  0x5e   :  { %346 = vadd.xlane.f32.xlu0 %v345_v55  ;;  %916 = vmatpush.msra.mxu2 %v749_v45  ;;  %v747_v55 = vld [vmem:[#allocation5 + $0x128] sm:$0xff] }
  0x5f   :  { %981 = vmatpush.msra.mxu3 %v765_v46  ;;  %787 = vmatpush.msra.mxu0 %v716_v47 }
  0x60   :  { %852 = vmatpush.msra.mxu1 %v732_v48  ;;  %917 = vmatpush.msra.mxu2 %v748_v49 }
  0x61   :  { %982 = vmatpush.msra.mxu3 %v764_v50  ;;  %788 = vmatpush.msra.mxu0 %v715_v52 }
  0x62   :  { %853 = vmatpush.msra.mxu1 %v731_v53  ;;  %918 = vmatpush.msra.mxu2 %v747_v55 }
  0x63   :  { %983 = vmatpush.msra.mxu3 %v763_v56  ;;  %789 = vmatpush.msra.mxu0 %v714_v57 }
  0x64   :  { %356 = vadd.xlane.f32.xlu1 %v355_v60  ;;  %854 = vmatpush.msra.mxu1 %v730_v58  ;;  %v762_v60 = vld [vmem:[#allocation5 + $0x1a0] sm:$0xff] }
  0x65   :  { %919 = vmatpush.msra.mxu2 %v746_v59  ;;  %984 = vmatpush.msra.mxu3 %v762_v60 }
  0x66   :  { %189 = vadd.xlane.f32.xlu0 %v188_v61  ;;  %v195_v61 = vadd.f32 %v1336_v25, %v194_v51  ;;  %790 = vmatpush.msra.mxu0 %v713_v62 }
  0x67   :  { %855 = vmatpush.msra.mxu1 %v729_v63  ;;  %920 = vmatpush.msra.mxu2 %v745_v0 }
  0x68   :  { %985 = vmatpush.msra.mxu3 %v761_v1  ;;  %791 = vmatpush.msra.mxu0 %v712_v3  ;;  %v1343_v12 = vsel %vm196_vm0, %v1336_v25, %v195_v61  ;;  %v742_v25 = vld [vmem:[#allocation5 + $0x100] sm:$0xff] }
  0x69   :  { %856 = vmatpush.msra.mxu1 %v728_v6  ;;  %921 = vmatpush.msra.mxu2 %v744_v7 }
  0x6a   :  { %986 = vmatpush.msra.mxu3 %v760_v10  ;;  %792 = vmatpush.msra.mxu0 %v711_v13 }
  0x6b   :  { %857 = vmatpush.msra.mxu1 %v727_v14  ;;  %922 = vmatpush.msra.mxu2 %v743_v18 }
  0x6c   :  { %987 = vmatpush.msra.mxu3 %v759_v21  ;;  %793 = vmatpush.msra.mxu0 %v710_v23 }
  0x6d   :  { %858 = vmatpush.msra.mxu1 %v726_v24  ;;  %923 = vmatpush.msra.mxu2 %v742_v25 }
  0x6e   :  { %988 = vmatpush.msra.mxu3 %v758_v27 }
  0x86   :  { %v125_v2 = vpop.xlane.xlu2 %124 }
  0x87   :  { %v120_v8 = vpop.xlane.xlu1 %119  ;;  %v1346_v19 = vmul.f32 %v1343_v12, %v125_v2 }
  0x88   :  { %v1349_v22 = vmul.f32 %v1343_v12, %v120_v8 }
  0x89   :  { %v115_v20 = vpop.xlane.xlu0 %114  ;;  %v376_v28 = vmul.f32 %v1346_v19, %v1346_v19 }
  0x8a   :  { %v1354_v29 = vmul.f32 %v1343_v12, %v115_v20  ;;  %v375_v31 = vmul.f32 %v1349_v22, %v1349_v22 }
  0x8c   :  { %v374_v38 = vmul.f32 %v1354_v29, %v1354_v29  ;;  %v406_v27 = vsub.f32 %v1294_v11, %v1354_v29 }
  0x8e   :  { %v292_v30 = vpop.xlane.xlu2 %291 }
  0x8f   :  { %v360_v32 = vmul.f32 %v292_v30, %v1343_v12  ;;  %v287_v33 = vpop.xlane.xlu1 %286  ;;  %v408_v30 = vsub.f32 %v1304_v17, %v1354_v29 }
  0x90   :  { %v359_v34 = vmul.f32 %v287_v33, %v1343_v12 }
  0x91   :  { %v392_v35 = vsub.f32 %v360_v32, %v376_v28  ;;  %v282_v36 = vpop.xlane.xlu0 %281  ;;  %v407_v28 = vsub.f32 %v1302_v16, %v1354_v29 }
  0x92   :  { %v391_v37 = vsub.f32 %v359_v34, %v375_v31  ;;  %v358_v39 = vmul.f32 %v282_v36, %v1343_v12  ;;  %v409_v34 = vsub.f32 %v1313_v26, %v1354_v29 }
  0x93   :  { %v1363_v40 = vadd.f32 1e-05, %v392_v35 }
  0x94   :  { %v1365_v41 = vadd.f32 1e-05, %v391_v37  ;;  %v390_v42 = vsub.f32 %v358_v39, %v374_v38 }
  0x95   :  { %vm512_vm7 = vweird.f32 %v1363_v40 }
  0x96   :  { %1085 = vrsqrt.f32 %v1365_v41  ;;  %v470_v44 = vadd.f32 1e-05, %v390_v42  ;;  %v135_v46 = vpop.xlane.xlu2 %134  ;;  %vm502_vm5 = vweird.f32 %v1365_v41 }
  0x97   :  { %1087 = vrsqrt.f32 %v1363_v40  ;;  %v297_v45 = vpop.xlane.xlu1 %296  ;;  %v1378_v52 = vmul.f32 %v1343_v12, %v135_v46 }
  0x98   :  { %1089 = vrsqrt.f32 %v470_v44  ;;  %v361_v48 = vmul.f32 %v297_v45, %v1343_v12  ;;  %vm492_vm2 = vweird.f32 %v470_v44 }
  0x99   :  { %v130_v47 = vpop.xlane.xlu0 %129  ;;  %v378_v62 = vmul.f32 %v1378_v52, %v1378_v52 }
  0x9a   :  { %v1371_v49 = vmul.f32 %v1343_v12, %v130_v47 }
  0x9c   :  { %v1373_v50 = vpop.eup %1085  ;;  %v377_v51 = vmul.f32 %v1371_v49, %v1371_v49 }
  0x9d   :  { %v1380_v53 = vpop.eup %1087  ;;  %v497_v55 = vmul.f32 %v1373_v50, %v1365_v41  ;;  %vm503_vm4 = vweird.f32 %v1373_v50  ;;  %v410_v41 = vsub.f32 %v1286_v4, %v1349_v22 }
  0x9e   :  { %v1090_v56 = vpop.eup %1089  ;;  %v393_v57 = vsub.f32 %v361_v48, %v377_v51  ;;  %v507_v0 = vmul.f32 %v1380_v53, %v1363_v40  ;;  %v307_v3 = vpop.xlane.xlu2 %306  ;;  %vm504_vm6 = vmor %vm502_vm5, %vm503_vm4  ;;  %vm513_vm8 = vweird.f32 %v1380_v53 }
  0x9f   :  { %v498_v58 = vmul.f32 %v1373_v50, %v497_v55  ;;  %v487_v59 = vmul.f32 %v1090_v56, %v470_v44  ;;  %v140_v60 = vpop.xlane.xlu1 %139  ;;  %v363_v13 = vmul.f32 %v307_v3, %v1343_v12  ;;  %vm493_vm1 = vweird.f32 %v1090_v56  ;;  %vm514_vm9 = vmor %vm512_vm7, %vm513_vm8 }
  0xa0   :  { %v1386_v61 = vmul.f32 %v1343_v12, %v140_v60  ;;  %v1390_v63 = vadd.f32 1e-05, %v393_v57  ;;  %v508_v18 = vmul.f32 %v1380_v53, %v507_v0  ;;  %vm494_vm3 = vmor %vm492_vm2, %vm493_vm1  ;;  %v411_v55 = vsub.f32 %v1288_v5, %v1349_v22 }
  0xa1   :  { %v488_v1 = vmul.f32 %v1090_v56, %v487_v59  ;;  %v302_v2 = vpop.xlane.xlu0 %301  ;;  %v499_v7 = vmul.f32 0.5, %v498_v58  ;;  %v413_v57 = vsub.f32 %v1300_v15, %v1349_v22 }
  0xa2   :  { %v362_v6 = vmul.f32 %v302_v2, %v1343_v12  ;;  %v379_v14 = vmul.f32 %v1386_v61, %v1386_v61  ;;  %1091 = vrsqrt.f32 %v1390_v63  ;;  %v509_v31 = vmul.f32 0.5, %v508_v18 }
  0xa3   :  { %v489_v8 = vmul.f32 0.5, %v488_v1  ;;  %v500_v23 = vsub.f32 1.5, %v499_v7  ;;  %vm522_vm10 = vweird.f32 %v1390_v63 }
  0xa4   :  { %v394_v10 = vsub.f32 %v362_v6, %v378_v62  ;;  %v395_v25 = vsub.f32 %v363_v13, %v379_v14  ;;  %v510_v44 = vsub.f32 1.5, %v509_v31  ;;  %v1117_v14 = vld [vmem:[#allocation2 + $0x40] sm:$0xff] }
  0xa5   :  { %v490_v20 = vsub.f32 1.5, %v489_v8  ;;  %v501_v17 = vmul.f32 %v1373_v50, %v500_v23  ;;  %v414_v18 = vsub.f32 %v1117_v14, %v1346_v19 }
  0xa6   :  { %v1400_v21 = vadd.f32 1e-05, %v394_v10  ;;  %v1418_v42 = vadd.f32 1e-05, %v395_v25  ;;  %v150_v47 = vpop.xlane.xlu2 %149 }
  0xa7   :  { %v491_v24 = vmul.f32 %v1090_v56, %v490_v20  ;;  %v312_v16 = vpop.xlane.xlu1 %311  ;;  %v505_v48 = vsel %vm504_vm6, %v1373_v50, %v501_v17  ;;  %v511_v50 = vmul.f32 %v1380_v53, %v510_v44  ;;  %v1443_v59 = vmul.f32 %v1343_v12, %v150_v47  ;;  %v1118_v20 = vld [vmem:[#allocation2 + $0x48] sm:$0xff] }
  0xa8   :  { %1093 = vrsqrt.f32 %v1400_v21  ;;  %v1411_v35 = vpop.eup %1091  ;;  %v364_v29 = vmul.f32 %v312_v16, %v1343_v12  ;;  %v650_v4 = vmul.f32 %v505_v48, %v410_v41  ;;  %v651_v60 = vmul.f32 %v505_v48, %v411_v55 }
  0xa9   :  { %v145_v32 = vpop.xlane.xlu0 %144  ;;  %v495_v33 = vsel %vm494_vm3, %v1090_v56, %v491_v24  ;;  %v517_v26 = vmul.f32 %v1411_v35, %v1390_v63  ;;  %1095 = vrsqrt.f32 %v1418_v42  ;;  %v412_v56 = vsub.f32 %v1290_v9, %v1349_v22  ;;  %v1119_v24 = vld [vmem:[#allocation2 + $0x50] sm:$0xff] }
  0xaa   :  { %v1414_v36 = vmul.f32 %v1343_v12, %v145_v32  ;;  %v646_v11 = vmul.f32 %v495_v33, %v406_v27  ;;  %v647_v37 = vmul.f32 %v495_v33, %v407_v28  ;;  %v648_v38 = vmul.f32 %v495_v33, %v408_v30  ;;  %v1120_v28 = vld [vmem:[#allocation2 + $0x58] sm:$0xff] }
  0xab   :  { %v649_v39 = vmul.f32 %v495_v33, %v409_v34  ;;  %v518_v51 = vmul.f32 %v1411_v35, %v517_v26  ;;  %v652_v9 = vmul.f32 %v505_v48, %v412_v56  ;;  %v653_v0 = vmul.f32 %v505_v48, %v413_v57  ;;  %v1122_v48 = vld [vmem:[#allocation2 + $0x68] sm:$0xff] }
  0xac   :  { %794 = vmatmul.f32.vlgmr.msra.gmra.mxu0 %v646_v11  ;;  %859 = vmatmul.f32.vlgmr.msra.gmra.mxu1 %v647_v37  ;;  %v380_v45 = vmul.f32 %v1414_v36, %v1414_v36  ;;  %v381_v3 = vmul.f32 %v1443_v59, %v1443_v59  ;;  %v515_v8 = vsel %vm514_vm9, %v1380_v53, %v511_v50  ;;  %vm523_vm11 = vweird.f32 %v1411_v35 }
  0xad   :  { %924 = vmatmul.f32.vlgmr.msra.gmra.mxu2 %v648_v38  ;;  %989 = vmatmul.f32.vlgmr.msra.gmra.mxu3 %v649_v39  ;;  %v519_v1 = vmul.f32 0.5, %v518_v51  ;;  %v415_v23 = vsub.f32 %v1118_v20, %v1346_v19  ;;  %v416_v25 = vsub.f32 %v1119_v24, %v1346_v19  ;;  %v417_v53 = vsub.f32 %v1120_v28, %v1346_v19  ;;  %vm524_vm12 = vmor %vm522_vm10, %vm523_vm11  ;;  %v1126_v20 = vld [vmem:[#allocation2 + $0x98] sm:$0xff] }
  0xae   :  { %v1426_v46 = vpop.eup %1093  ;;  %v396_v58 = vsub.f32 %v364_v29, %v380_v45  ;;  %v322_v27 = vpop.xlane.xlu2 %321  ;;  %v654_v31 = vmul.f32 %v515_v8, %v414_v18  ;;  %v1121_v45 = vld [vmem:[#allocation2 + $0x60] sm:$0xff]  ;;  %v419_v51 = vsub.f32 %v1122_v48, %v1371_v49  ;;  %v420_v41 = vsub.f32 %v1324_v43, %v1371_v49 }
  0xaf   :  { %v527_v5 = vmul.f32 %v1426_v46, %v1400_v21  ;;  %v155_v15 = vpop.xlane.xlu1 %154  ;;  %v1447_v22 = vpop.eup %1095  ;;  %v520_v10 = vsub.f32 1.5, %v519_v1  ;;  %v655_v32 = vmul.f32 %v515_v8, %v415_v23  ;;  %v656_v34 = vmul.f32 %v515_v8, %v416_v25 }
  0xb0   :  { %v1449_v2 = vadd.f32 1e-05, %v396_v58  ;;  %v1461_v13 = vmul.f32 %v1343_v12, %v155_v15  ;;  %v537_v40 = vmul.f32 %v1447_v22, %v1418_v42  ;;  %v657_v11 = vmul.f32 %v515_v8, %v417_v53 }
  0xb1   :  { %v317_v62 = vpop.xlane.xlu0 %316  ;;  %v528_v7 = vmul.f32 %v1426_v46, %v527_v5  ;;  %v521_v37 = vmul.f32 %v1411_v35, %v520_v10  ;;  %v366_v38 = vmul.f32 %v322_v27, %v1343_v12  ;;  %v418_v47 = vsub.f32 %v1121_v45, %v1371_v49  ;;  %v1125_v10 = vld [vmem:[#allocation2 + $0x90] sm:$0xff] }
  0xb2   :  { %v365_v6 = vmul.f32 %v317_v62, %v1343_v12  ;;  %1097 = vrsqrt.f32 %v1449_v2  ;;  %v382_v16 = vmul.f32 %v1461_v13, %v1461_v13  ;;  %v538_v19 = vmul.f32 %v1447_v22, %v537_v40 }
  0xb3   :  { %v529_v33 = vmul.f32 0.5, %v528_v7  ;;  %v525_v44 = vsel %vm524_vm12, %v1411_v35, %v521_v37  ;;  %vm532_vm13 = vweird.f32 %v1400_v21  ;;  %v421_v56 = vsub.f32 %v1330_v54, %v1371_v49  ;;  %v1124_v7 = vld [vmem:[#allocation2 + $0x88] sm:$0xff] }
  0xb4   :  { %797 = vmatmul.f32.gmra.mxu0 %v650_v4  ;;  %862 = vmatmul.f32.gmra.mxu1 %v651_v60  ;;  %v397_v30 = vsub.f32 %v365_v6, %v381_v3  ;;  %v398_v29 = vsub.f32 %v366_v38, %v382_v16  ;;  %v539_v55 = vmul.f32 0.5, %v538_v19  ;;  %vm533_vm14 = vweird.f32 %v1426_v46  ;;  %v1123_v6 = vld [vmem:[#allocation2 + $0x80] sm:$0xff] }
  0xb5   :  { %927 = vmatmul.f32.gmra.mxu2 %v652_v9  ;;  %992 = vmatmul.f32.gmra.mxu3 %v653_v0  ;;  %v530_v39 = vsub.f32 1.5, %v529_v33  ;;  %v658_v57 = vmul.f32 %v525_v44, %v418_v47  ;;  %v659_v50 = vmul.f32 %v525_v44, %v419_v51  ;;  %v660_v43 = vmul.f32 %v525_v44, %v420_v41  ;;  %vm534_vm15 = vmor %vm532_vm13, %vm533_vm14  ;;  %v1127_v33 = vld [vmem:[#allocation2 + $0xa0] sm:$0xff]  ;;  %v1130_v47 = vld [vmem:[#allocation2 + $0xb8] sm:$0xff] }
  0xb6   :  { %v1477_v63 = vadd.f32 1e-05, %v397_v30  ;;  %v661_v60 = vmul.f32 %v525_v44, %v421_v56  ;;  %v1497_v62 = vadd.f32 1e-05, %v398_v29  ;;  %v540_v54 = vsub.f32 1.5, %v539_v55  ;;  %v165_v0 = vpop.xlane.xlu2 %164 }
  0xb7   :  { %v327_v4 = vpop.xlane.xlu1 %326  ;;  %v531_v5 = vmul.f32 %v1426_v46, %v530_v39  ;;  %v422_v21 = vsub.f32 %v1123_v6, %v1378_v52  ;;  %v423_v8 = vsub.f32 %v1124_v7, %v1378_v52  ;;  %v424_v14 = vsub.f32 %v1125_v10, %v1378_v52  ;;  %v1129_v39 = vld [vmem:[#allocation2 + $0xb0] sm:$0xff] }
  0xb8   :  { %v1480_v26 = vpop.eup %1097  ;;  %1099 = vrsqrt.f32 %v1477_v63  ;;  %v367_v49 = vmul.f32 %v327_v4, %v1343_v12  ;;  %vm542_vm0 = vweird.f32 %v1418_v42  ;;  %v1514_v18 = vmul.f32 %v1343_v12, %v165_v0  ;;  %v1132_v0 = vld [vmem:[#allocation2 + $0xc8] sm:$0xff]  ;;  %v1133_v7 = vld [vmem:[#allocation2 + $0xd0] sm:$0xff] }
  0xb9   :  { %v160_v17 = vpop.xlane.xlu0 %159  ;;  %v547_v58 = vmul.f32 %v1480_v26, %v1449_v2  ;;  %v535_v15 = vsel %vm534_vm15, %v1426_v46, %v531_v5  ;;  %1101 = vrsqrt.f32 %v1497_v62  ;;  %v425_v46 = vsub.f32 %v1126_v20, %v1378_v52 }
  0xba   :  { %v1492_v35 = vmul.f32 %v1343_v12, %v160_v17  ;;  %vm543_vm1 = vweird.f32 %v1447_v22  ;;  %v662_v24 = vmul.f32 %v535_v15, %v422_v21  ;;  %v663_v25 = vmul.f32 %v535_v15, %v423_v8  ;;  %v1134_v8 = vld [vmem:[#allocation2 + $0xd8] sm:$0xff] }
  0xbb   :  { %v548_v1 = vmul.f32 %v1480_v26, %v547_v58  ;;  %v541_v40 = vmul.f32 %v1447_v22, %v540_v54  ;;  %v664_v30 = vmul.f32 %v535_v15, %v424_v14  ;;  %vm1523_vm2 = vmor %vm542_vm0, %vm543_vm1  ;;  %v384_v42 = vmul.f32 %v1514_v18, %v1514_v18 }
  0xbc   :  { %800 = vmatmul.f32.gmra.mxu0 %v654_v31  ;;  %865 = vmatmul.f32.gmra.mxu1 %v655_v32  ;;  %v383_v9 = vmul.f32 %v1492_v35, %v1492_v35  ;;  %v665_v31 = vmul.f32 %v535_v15, %v425_v46  ;;  %v428_v17 = vsub.f32 %v1129_v39, %v1386_v61  ;;  %vm552_vm3 = vweird.f32 %v1449_v2 }
  0xbd   :  { %930 = vmatmul.f32.gmra.mxu2 %v656_v34  ;;  %995 = vmatmul.f32.gmra.mxu3 %v657_v11  ;;  %v549_v27 = vmul.f32 0.5, %v548_v1  ;;  %v426_v34 = vsub.f32 %v1127_v33, %v1386_v61  ;;  %v1128_v11 = vld [vmem:[#allocation2 + $0xa8] sm:$0xff]  ;;  %v545_v45 = vsel %vm1523_vm2, %v1447_v22, %v541_v40  ;;  %v429_v48 = vsub.f32 %v1130_v47, %v1386_v61 }
  0xbe   :  { %v1506_v3 = vpop.eup %1099  ;;  %v399_v23 = vsub.f32 %v367_v49, %v383_v9  ;;  %v427_v37 = vsub.f32 %v1128_v11, %v1386_v61  ;;  %v337_v55 = vpop.xlane.xlu2 %336  ;;  %vm553_vm4 = vweird.f32 %v1480_v26  ;;  %v668_v58 = vmul.f32 %v545_v45, %v428_v17  ;;  %v1131_v49 = vld [vmem:[#allocation2 + $0xc0] sm:$0xff]  ;;  %v1136_v11 = vld [vmem:[#allocation2 + $0xe8] sm:$0xff]  ;;  %v1138_v17 = vld [vmem:[#allocation2 + $0xf8] sm:$0xff] }
  0xbf   :  { %v557_v28 = vmul.f32 %v1506_v3, %v1477_v63  ;;  %v170_v32 = vpop.xlane.xlu1 %169  ;;  %v1529_v38 = vpop.eup %1101  ;;  %v550_v44 = vsub.f32 1.5, %v549_v27  ;;  %v669_v4 = vmul.f32 %v545_v45, %v429_v48  ;;  %vm554_vm5 = vmor %vm552_vm3, %vm553_vm4  ;;  %v430_v9 = vsub.f32 %v1131_v49, %v1414_v36 }
  0xc0   :  { %v1531_v16 = vadd.f32 1e-05, %v399_v23  ;;  %v1543_v51 = vmul.f32 %v1343_v12, %v170_v32  ;;  %v567_v41 = vmul.f32 %v1529_v38, %v1497_v62  ;;  %v431_v1 = vsub.f32 %v1132_v0, %v1414_v36  ;;  %v1141_v0 = vld [vmem:[#allocation2 + $0x110] sm:$0xff] }
  0xc1   :  { %v332_v53 = vpop.xlane.xlu0 %331  ;;  %v558_v29 = vmul.f32 %v1506_v3, %v557_v28  ;;  %v551_v61 = vmul.f32 %v1480_v26, %v550_v44  ;;  %v432_v2 = vsub.f32 %v1133_v7, %v1414_v36  ;;  %v433_v10 = vsub.f32 %v1134_v8, %v1414_v36  ;;  %v1142_v7 = vld [vmem:[#allocation2 + $0x118] sm:$0xff] }
  0xc2   :  { %v368_v19 = vmul.f32 %v332_v53, %v1343_v12  ;;  %1103 = vrsqrt.f32 %v1531_v16  ;;  %v568_v5 = vmul.f32 %v1529_v38, %v567_v41  ;;  %vm562_vm6 = vweird.f32 %v1477_v63 }
  0xc3   :  { %v559_v22 = vmul.f32 0.5, %v558_v29  ;;  %v555_v21 = vsel %vm554_vm5, %v1480_v26, %v551_v61  ;;  %vm563_vm7 = vweird.f32 %v1506_v3  ;;  %v437_v44 = vsub.f32 %v1138_v17, %v1443_v59 }
  0xc4   :  { %803 = vmatmul.f32.gmra.mxu0 %v658_v57  ;;  %868 = vmatmul.f32.gmra.mxu1 %v659_v50  ;;  %v400_v56 = vsub.f32 %v368_v19, %v384_v42  ;;  %v666_v57 = vmul.f32 %v545_v45, %v426_v34  ;;  %v667_v50 = vmul.f32 %v545_v45, %v427_v37  ;;  %v569_v46 = vmul.f32 0.5, %v568_v5  ;;  %vm564_vm8 = vmor %vm562_vm6, %vm563_vm7  ;;  %v1137_v19 = vld [vmem:[#allocation2 + $0xf0] sm:$0xff] }
  0xc5   :  { %933 = vmatmul.f32.gmra.mxu2 %v660_v43  ;;  %998 = vmatmul.f32.gmra.mxu3 %v661_v60  ;;  %v369_v43 = vmul.f32 %v337_v55, %v1343_v12  ;;  %v385_v60 = vmul.f32 %v1543_v51, %v1543_v51  ;;  %v560_v15 = vsub.f32 1.5, %v559_v22  ;;  %v670_v26 = vmul.f32 %v555_v21, %v430_v9  ;;  %v1139_v22 = vld [vmem:[#allocation2 + $0x100] sm:$0xff] }
  0xc6   :  { %v1557_v54 = vadd.f32 1e-05, %v400_v56  ;;  %v672_v36 = vmul.f32 %v555_v21, %v432_v2  ;;  %v673_v27 = vmul.f32 %v555_v21, %v433_v10  ;;  %v570_v52 = vsub.f32 1.5, %v569_v46  ;;  %v180_v34 = vpop.xlane.xlu2 %179 }
  0xc7   :  { %v401_v20 = vsub.f32 %v369_v43, %v385_v60  ;;  %v342_v40 = vpop.xlane.xlu1 %341  ;;  %v561_v28 = vmul.f32 %v1506_v3, %v560_v15  ;;  %v435_v37 = vsub.f32 %v1136_v11, %v1443_v59  ;;  %v436_v39 = vsub.f32 %v1137_v19, %v1443_v59 }
  0xc8   :  { %v1564_v14 = vpop.eup %1103  ;;  %1105 = vrsqrt.f32 %v1557_v54  ;;  %v370_v32 = vmul.f32 %v342_v40, %v1343_v12  ;;  %vm572_vm9 = vweird.f32 %v1497_v62  ;;  %v1593_v45 = vmul.f32 %v1343_v12, %v180_v34 }
  0xc9   :  { %v175_v6 = vpop.xlane.xlu0 %174  ;;  %v1575_v53 = vadd.f32 1e-05, %v401_v20  ;;  %v565_v63 = vsel %vm564_vm8, %v1506_v3, %v561_v28  ;;  %vm573_vm10 = vweird.f32 %v1529_v38  ;;  %v571_v41 = vmul.f32 %v1529_v38, %v570_v52 }
  0xca   :  { %v1570_v23 = vmul.f32 %v1343_v12, %v175_v6  ;;  %v675_v3 = vmul.f32 %v565_v63, %v435_v37  ;;  %vm1599_vm11 = vmor %vm572_vm9, %vm573_vm10  ;;  %v387_v5 = vmul.f32 %v1593_v45, %v1593_v45  ;;  %v441_v2 = vsub.f32 %v1142_v7, %v1461_v13  ;;  %v1145_v37 = vld [vmem:[#allocation2 + $0x130] sm:$0xff] }
  0xcb   :  { %1107 = vrsqrt.f32 %v1575_v53  ;;  %vm582_vm12 = vweird.f32 %v1531_v16  ;;  %vm583_vm13 = vweird.f32 %v1564_v14  ;;  %vm592_vm15 = vweird.f32 %v1557_v54 }
  0xcc   :  { %806 = vmatmul.f32.gmra.mxu0 %v662_v24  ;;  %871 = vmatmul.f32.gmra.mxu1 %v663_v25  ;;  %v671_v24 = vmul.f32 %v555_v21, %v431_v1  ;;  %v577_v25 = vmul.f32 %v1564_v14, %v1531_v16  ;;  %v386_v33 = vmul.f32 %v1570_v23, %v1570_v23  ;;  %vm584_vm14 = vmor %vm582_vm12, %vm583_vm13  ;;  %vm602_vm2 = vweird.f32 %v1575_v53 }
  0xcd   :  { %936 = vmatmul.f32.gmra.mxu2 %v664_v30  ;;  %1001 = vmatmul.f32.gmra.mxu3 %v665_v31  ;;  %v1135_v30 = vld [vmem:[#allocation2 + $0xe0] sm:$0xff]  ;;  %v440_v1 = vsub.f32 %v1141_v0, %v1461_v13  ;;  %v575_v21 = vsel %vm1599_vm11, %v1529_v38, %v571_v41  ;;  %v1150_v0 = vld [vmem:[#allocation2 + $0x158] sm:$0xff] }
  0xce   :  { %v434_v31 = vsub.f32 %v1135_v30, %v1443_v59  ;;  %v578_v42 = vmul.f32 %v1564_v14, %v577_v25  ;;  %v1588_v29 = vpop.eup %1105  ;;  %v402_v47 = vsub.f32 %v370_v32, %v386_v33  ;;  %v352_v46 = vpop.xlane.xlu2 %351  ;;  %v681_v40 = vmul.f32 %v575_v21, %v441_v2  ;;  %v1144_v32 = vld [vmem:[#allocation2 + $0x128] sm:$0xff] }
  0xcf   :  { %v587_v59 = vmul.f32 %v1588_v29, %v1557_v54  ;;  %v185_v9 = vpop.xlane.xlu1 %184  ;;  %v680_v25 = vmul.f32 %v575_v21, %v440_v1  ;;  %v443_v33 = vsub.f32 %v1144_v32, %v1492_v35  ;;  %vm593_vm0 = vweird.f32 %v1588_v29 }
  0xd0   :  { %v674_v48 = vmul.f32 %v565_v63, %v434_v31  ;;  %v579_v55 = vmul.f32 0.5, %v578_v42  ;;  %v1607_v60 = vadd.f32 1e-05, %v402_v47  ;;  %v1622_v10 = vmul.f32 %v1343_v12, %v185_v9  ;;  %v1143_v31 = vld [vmem:[#allocation2 + $0x120] sm:$0xff]  ;;  %vm594_vm1 = vmor %vm592_vm15, %vm593_vm0 }
  0xd1   :  { %v347_v56 = vpop.xlane.xlu0 %346  ;;  %v1605_v43 = vpop.eup %1107  ;;  %v588_v6 = vmul.f32 %v1588_v29, %v587_v59  ;;  %v442_v52 = vsub.f32 %v1143_v31, %v1492_v35  ;;  %v444_v42 = vsub.f32 %v1145_v37, %v1492_v35  ;;  %v449_v1 = vsub.f32 %v1150_v0, %v1514_v18 }
  0xd2   :  { %v371_v49 = vmul.f32 %v347_v56, %v1343_v12  ;;  %v580_v15 = vsub.f32 1.5, %v579_v55  ;;  %v597_v8 = vmul.f32 %v1605_v43, %v1575_v53  ;;  %1109 = vrsqrt.f32 %v1607_v60  ;;  %v1151_v53 = vld [vmem:[#allocation2 + $0x160] sm:$0xff] }
  0xd3   :  { %v589_v38 = vmul.f32 0.5, %v588_v6  ;;  %v388_v28 = vmul.f32 %v1622_v10, %v1622_v10  ;;  %vm603_vm3 = vweird.f32 %v1605_v43  ;;  %vm612_vm5 = vweird.f32 %v1607_v60 }
  0xd4   :  { %809 = vmatmul.f32.gmra.mxu0 %v666_v57  ;;  %874 = vmatmul.f32.gmra.mxu1 %v667_v50  ;;  %v676_v57 = vmul.f32 %v565_v63, %v436_v39  ;;  %v677_v50 = vmul.f32 %v565_v63, %v437_v44  ;;  %v403_v20 = vsub.f32 %v371_v49, %v387_v5  ;;  %v1146_v63 = vld [vmem:[#allocation2 + $0x138] sm:$0xff]  ;;  %v1149_v49 = vld [vmem:[#allocation2 + $0x150] sm:$0xff]  ;;  %vm604_vm4 = vmor %vm602_vm2, %vm603_vm3 }
  0xd5   :  { %939 = vmatmul.f32.gmra.mxu2 %v668_v58  ;;  %1004 = vmatmul.f32.gmra.mxu3 %v669_v4  ;;  %v438_v58 = vsub.f32 %v1139_v22, %v1461_v13  ;;  %v1140_v4 = vld [vmem:[#allocation2 + $0x108] sm:$0xff]  ;;  %v590_v34 = vsub.f32 1.5, %v589_v38  ;;  %v445_v19 = vsub.f32 %v1146_v63, %v1492_v35  ;;  %v448_v9 = vsub.f32 %v1149_v49, %v1514_v18  ;;  %v1153_v38 = vld [vmem:[#allocation2 + $0x170] sm:$0xff] }
  0xd6   :  { %v439_v61 = vsub.f32 %v1140_v4, %v1461_v13  ;;  %v581_v13 = vmul.f32 %v1564_v14, %v580_v15  ;;  %v1633_v30 = vadd.f32 1e-05, %v403_v20  ;;  %v1148_v4 = vld [vmem:[#allocation2 + $0x148] sm:$0xff] }
  0xd7   :  { %v357_v41 = vpop.xlane.xlu1 %356  ;;  %v591_v59 = vmul.f32 %v1588_v29, %v590_v34 }
  0xd8   :  { %v585_v11 = vsel %vm584_vm14, %v1564_v14, %v581_v13  ;;  %v1640_v39 = vpop.eup %1109  ;;  %1111 = vrsqrt.f32 %v1633_v30  ;;  %v373_v22 = vmul.f32 %v357_v41, %v1343_v12  ;;  %vm622_vm8 = vweird.f32 %v1633_v30 }
  0xd9   :  { %v190_v16 = vpop.xlane.xlu0 %189  ;;  %v682_v14 = vmul.f32 %v585_v11, %v442_v52  ;;  %v684_v35 = vmul.f32 %v585_v11, %v444_v42  ;;  %v685_v55 = vmul.f32 %v585_v11, %v445_v19  ;;  %v595_v54 = vsel %vm594_vm1, %v1588_v29, %v591_v59  ;;  %v1156_v42 = vld [vmem:[#allocation2 + $0x188] sm:$0xff] }
  0xda   :  { %v1646_v47 = vmul.f32 %v1343_v12, %v190_v16  ;;  %v689_v20 = vmul.f32 %v595_v54, %v449_v1  ;;  %vm613_vm6 = vweird.f32 %v1640_v39  ;;  %v455_v63 = vsub.f32 %v1156_v42, %v1570_v23 }
  0xdb   :  { %vm614_vm7 = vmor %vm612_vm5, %vm613_vm6 }
  0xdc   :  { %812 = vmatmul.f32.gmra.mxu0 %v670_v26  ;;  %877 = vmatmul.f32.gmra.mxu1 %v671_v24  ;;  %v678_v26 = vmul.f32 %v575_v21, %v438_v58  ;;  %v679_v24 = vmul.f32 %v575_v21, %v439_v61  ;;  %v389_v58 = vmul.f32 %v1646_v47, %v1646_v47 }
  0xdd   :  { %942 = vmatmul.f32.gmra.mxu2 %v672_v36  ;;  %1007 = vmatmul.f32.gmra.mxu3 %v673_v27  ;;  %v598_v36 = vmul.f32 %v1605_v43, %v597_v8  ;;  %v372_v27 = vmul.f32 %v352_v46, %v1343_v12  ;;  %v447_v61 = vsub.f32 %v1148_v4, %v1514_v18  ;;  %v1161_v4 = vld [vmem:[#allocation2 + $0x1b0] sm:$0xff] }
  0xde   :  { %v1664_v15 = vpop.eup %1111  ;;  %v405_v12 = vsub.f32 %v373_v22, %v389_v58  ;;  %v688_v8 = vmul.f32 %v595_v54, %v448_v9  ;;  %v450_v46 = vsub.f32 %v1151_v53, %v1543_v51  ;;  %v1160_v22 = vld [vmem:[#allocation2 + $0x1a8] sm:$0xff]  ;;  %v1162_v9 = vld [vmem:[#allocation2 + $0x1b8] sm:$0xff]  ;;  %v1165_v53 = vld [vmem:[#allocation2 + $0x1d0] sm:$0xff] }
  0xdf   :  { %v599_v17 = vmul.f32 0.5, %v598_v36  ;;  %v404_v44 = vsub.f32 %v372_v27, %v388_v28  ;;  %v687_v21 = vmul.f32 %v595_v54, %v447_v61  ;;  %v617_v2 = vmul.f32 %v1664_v15, %v1633_v30  ;;  %v1154_v28 = vld [vmem:[#allocation2 + $0x178] sm:$0xff] }
  0xe0   :  { %v453_v31 = vsub.f32 %v1154_v28, %v1543_v51  ;;  %vm623_vm9 = vweird.f32 %v1664_v15  ;;  %v459_v58 = vsub.f32 %v1160_v22, %v1593_v45  ;;  %v460_v61 = vsub.f32 %v1161_v4, %v1593_v45 }
  0xe1   :  { %v1653_v56 = vadd.f32 1e-05, %v404_v44  ;;  %v600_v62 = vsub.f32 1.5, %v599_v17  ;;  %v618_v36 = vmul.f32 %v1664_v15, %v617_v2  ;;  %v1157_v44 = vld [vmem:[#allocation2 + $0x190] sm:$0xff]  ;;  %vm624_vm10 = vmor %vm622_vm8, %vm623_vm9  ;;  %v461_v0 = vsub.f32 %v1162_v9, %v1593_v45 }
  0xe3   :  { %1113 = vrsqrt.f32 %v1653_v56  ;;  %v601_v7 = vmul.f32 %v1605_v43, %v600_v62  ;;  %v619_v34 = vmul.f32 0.5, %v618_v36  ;;  %vm632_vm11 = vweird.f32 %v1653_v56 }
  0xe4   :  { %815 = vmatmul.f32.gmra.mxu0 %v674_v48  ;;  %880 = vmatmul.f32.gmra.mxu1 %v675_v3  ;;  %v683_v48 = vmul.f32 %v585_v11, %v443_v33  ;;  %v607_v3 = vmul.f32 %v1640_v39, %v1607_v60 }
  0xe5   :  { %945 = vmatmul.f32.gmra.mxu2 %v676_v57  ;;  %1010 = vmatmul.f32.gmra.mxu3 %v677_v50  ;;  %v1147_v57 = vld [vmem:[#allocation2 + $0x140] sm:$0xff]  ;;  %v605_v27 = vsel %vm604_vm4, %v1605_v43, %v601_v7  ;;  %v620_v19 = vsub.f32 1.5, %v619_v34 }
  0xe6   :  { %v446_v50 = vsub.f32 %v1147_v57, %v1514_v18  ;;  %v608_v5 = vmul.f32 %v1640_v39, %v607_v3  ;;  %v1672_v18 = vadd.f32 1e-05, %v405_v12  ;;  %v690_v32 = vmul.f32 %v605_v27, %v450_v46  ;;  %v1155_v43 = vld [vmem:[#allocation2 + $0x180] sm:$0xff] }
  0xe7   :  { %v693_v11 = vmul.f32 %v605_v27, %v453_v31  ;;  %v454_v60 = vsub.f32 %v1155_v43, %v1570_v23  ;;  %v621_v62 = vmul.f32 %v1664_v15, %v620_v19  ;;  %v464_v46 = vsub.f32 %v1165_v53, %v1622_v10  ;;  %v1168_v31 = vld [vmem:[#allocation2 + $0x1e8] sm:$0xff]  ;;  %v1726_v43 = vld [vmem:[%s1752_s2] ss:$0 sm:$0xff]  ;;  %s1256_s2 = smov [#allocation7]  }
  0xe8   :  { %v686_v6 = vmul.f32 %v595_v54, %v446_v50  ;;  %v609_v29 = vmul.f32 0.5, %v608_v5  ;;  %1115 = vrsqrt.f32 %v1672_v18  ;;  %vm642_vm14 = vweird.f32 %v1672_v18  ;;  %s1058_s26 = sshll.u32 %s1256_s2, 4  ;;  %s1059_s26 = int_to_ptr.vmem [resolvable:$true] %s1058_s26 }
  0xe9   :  { %v625_v49 = vsel %vm624_vm10, %v1664_v15, %v621_v62  ;;  %v1163_v15 = vld [vmem:[#allocation2 + $0x1c0] sm:$0xff] }
  0xea   :  { %v610_v13 = vsub.f32 1.5, %v609_v29  ;;  %v699_v12 = vmul.f32 %v625_v49, %v459_v58  ;;  %v701_v7 = vmul.f32 %v625_v49, %v461_v0  ;;  %v462_v2 = vsub.f32 %v1163_v15, %v1622_v10 }
  0xec   :  { %818 = vmatmul.f32.gmra.mxu0 %v678_v26  ;;  %883 = vmatmul.f32.gmra.mxu1 %v679_v24  ;;  %v1152_v26 = vld [vmem:[#allocation2 + $0x168] sm:$0xff]  ;;  %v611_v37 = vmul.f32 %v1640_v39, %v610_v13 }
  0xed   :  { %948 = vmatmul.f32.gmra.mxu2 %v680_v25  ;;  %1013 = vmatmul.f32.gmra.mxu3 %v681_v40  ;;  %v451_v24 = vsub.f32 %v1152_v26, %v1543_v51  ;;  %v452_v25 = vsub.f32 %v1153_v38, %v1543_v51  ;;  %v1677_v40 = vpop.eup %1113  ;;  %v1166_v26 = vld [vmem:[#allocation2 + $0x1d8] sm:$0xff] }
  0xee   :  { %v627_v52 = vmul.f32 %v1677_v40, %v1653_v56  ;;  %v615_v17 = vsel %vm614_vm7, %v1640_v39, %v611_v37  ;;  %v1694_v41 = vpop.eup %1115  ;;  %vm633_vm12 = vweird.f32 %v1677_v40 }
  0xef   :  { %v691_v33 = vmul.f32 %v605_v27, %v451_v24  ;;  %v692_v16 = vmul.f32 %v605_v27, %v452_v25  ;;  %v695_v59 = vmul.f32 %v615_v17, %v455_v63  ;;  %v637_v57 = vmul.f32 %v1694_v41, %v1672_v18  ;;  %vm634_vm13 = vmor %vm632_vm11, %vm633_vm12 }
  0xf0   :  { %v628_v51 = vmul.f32 %v1677_v40, %v627_v52  ;;  %v465_v24 = vsub.f32 %v1166_v26, %v1622_v10  ;;  %vm643_vm15 = vweird.f32 %v1694_v41  ;;  %v1169_v52 = vld [vmem:[#allocation2 + $0x1f0] sm:$0xff] }
  0xf1   :  { %v638_v54 = vmul.f32 %v1694_v41, %v637_v57  ;;  %vm644_vm0 = vmor %vm642_vm14, %vm643_vm15 }
  0xf4   :  { %821 = vmatmul.f32.gmra.mxu0 %v682_v14  ;;  %886 = vmatmul.f32.gmra.mxu1 %v683_v48  ;;  %v456_v14 = vsub.f32 %v1157_v44, %v1570_v23  ;;  %v1158_v48 = vld [vmem:[#allocation2 + $0x198] sm:$0xff] }
  0xf5   :  { %951 = vmatmul.f32.gmra.mxu2 %v684_v35  ;;  %1016 = vmatmul.f32.gmra.mxu3 %v685_v55  ;;  %v457_v3 = vsub.f32 %v1158_v48, %v1570_v23  ;;  %v629_v35 = vmul.f32 0.5, %v628_v51  ;;  %v694_v55 = vmul.f32 %v615_v17, %v454_v60  ;;  %v1159_v23 = vld [vmem:[#allocation2 + $0x1a0] sm:$0xff] }
  0xf6   :  { %v696_v50 = vmul.f32 %v615_v17, %v456_v14  ;;  %v458_v30 = vsub.f32 %v1159_v23, %v1593_v45  ;;  %v1164_v45 = vld [vmem:[#allocation2 + $0x1c8] sm:$0xff] }
  0xf7   :  { %v697_v39 = vmul.f32 %v615_v17, %v457_v3  ;;  %v630_v5 = vsub.f32 1.5, %v629_v35  ;;  %v463_v56 = vsub.f32 %v1164_v45, %v1622_v10  ;;  %v467_v10 = vsub.f32 %v1168_v31, %v1646_v47 }
  0xf8   :  { %v698_v1 = vmul.f32 %v625_v49, %v458_v30 }
  0xf9   :  { %v631_v29 = vmul.f32 %v1677_v40, %v630_v5 }
  0xfc   :  { %824 = vmatmul.f32.gmra.mxu0 %v686_v6  ;;  %889 = vmatmul.f32.gmra.mxu1 %v687_v21  ;;  %v639_v6 = vmul.f32 0.5, %v638_v54  ;;  %v700_v21 = vmul.f32 %v625_v49, %v460_v61 }
  0xfd   :  { %954 = vmatmul.f32.gmra.mxu2 %v688_v8  ;;  %1019 = vmatmul.f32.gmra.mxu3 %v689_v20  ;;  %v635_v20 = vsel %vm634_vm13, %v1677_v40, %v631_v29  ;;  %v1167_v40 = vld [vmem:[#allocation2 + $0x1e0] sm:$0xff] }
  0xfe   :  { %v640_v8 = vsub.f32 1.5, %v639_v6  ;;  %v702_v38 = vmul.f32 %v635_v20, %v462_v2  ;;  %v703_v25 = vmul.f32 %v635_v20, %v463_v56  ;;  %v704_v13 = vmul.f32 %v635_v20, %v464_v46 }
  0xff   :  { %v705_v36 = vmul.f32 %v635_v20, %v465_v24  ;;  %v466_v28 = vsub.f32 %v1167_v40, %v1646_v47 }
 0x100   :  { %v641_v27 = vmul.f32 %v1694_v41, %v640_v8 }
 0x102   :  { %v645_v18 = vsel %vm644_vm0, %v1694_v41, %v641_v27 }
 0x104   :  { %827 = vmatmul.f32.gmra.mxu0 %v690_v32  ;;  %892 = vmatmul.f32.gmra.mxu1 %v691_v33  ;;  %v468_v32 = vsub.f32 %v1169_v52, %v1646_v47  ;;  %v1170_v33 = vld [vmem:[#allocation2 + $0x1f8] sm:$0xff] }
 0x105   :  { %957 = vmatmul.f32.gmra.mxu2 %v692_v16  ;;  %1022 = vmatmul.f32.gmra.mxu3 %v693_v11  ;;  %v469_v34 = vsub.f32 %v1170_v33, %v1646_v47  ;;  %v706_v16 = vmul.f32 %v645_v18, %v466_v28  ;;  %v707_v11 = vmul.f32 %v645_v18, %v467_v10 }
 0x106   :  { %v708_v37 = vmul.f32 %v645_v18, %v468_v32 }
 0x107   :  { %v709_v51 = vmul.f32 %v645_v18, %v469_v34 }
 0x10c   :  { %830 = vmatmul.f32.gmra.mxu0 %v694_v55  ;;  %895 = vmatmul.f32.gmra.mxu1 %v695_v59 }
 0x10d   :  { %960 = vmatmul.f32.gmra.mxu2 %v696_v50  ;;  %1025 = vmatmul.f32.gmra.mxu3 %v697_v39 }
 0x114   :  { %833 = vmatmul.f32.gmra.mxu0 %v698_v1  ;;  %898 = vmatmul.f32.gmra.mxu1 %v699_v12 }
 0x115   :  { %963 = vmatmul.f32.gmra.mxu2 %v700_v21  ;;  %1028 = vmatmul.f32.gmra.mxu3 %v701_v7 }
 0x11c   :  { %836 = vmatmul.f32.gmra.mxu0 %v702_v38  ;;  %901 = vmatmul.f32.gmra.mxu1 %v703_v25 }
 0x11d   :  { %966 = vmatmul.f32.gmra.mxu2 %v704_v13  ;;  %1031 = vmatmul.f32.gmra.mxu3 %v705_v36 }
 0x124   :  { %839 = vmatmul.f32.gmra.mxu0 %v706_v16  ;;  %904 = vmatmul.f32.gmra.mxu1 %v707_v11 }
 0x125   :  { %969 = vmatmul.f32.gmra.mxu2 %v708_v37  ;;  %1034 = vmatmul.f32.gmra.mxu3 %v709_v51 }
 0x129   :  { %v795_v60 = vpop.f32.mrf.mxu0  ;;  %v860_v42 = vpop.f32.mrf.mxu1 }
 0x12a   :  { %v796_v63 = vadd.f32 %v1726_v43, %v795_v60 }
 0x12c   :  { %v861_v19 = vadd.f32 %v860_v42, %v796_v63 }
 0x130   :  { %v925_v17 = vpop.f32.mrf.mxu2  ;;  %v990_v47 = vpop.f32.mrf.mxu3 }
 0x131   :  { %v926_v44 = vadd.f32 %v925_v17, %v861_v19  ;;  %v798_v14 = vpop.f32.mrf.mxu0  ;;  %v863_v48 = vpop.f32.mrf.mxu1 }
 0x132   :  { %v799_v41 = vadd.f32 %v1726_v43, %v798_v14 }
 0x133   :  { %v991_v3 = vadd.f32 %v990_v47, %v926_v44 }
 0x134   :  { %v864_v35 = vadd.f32 %v863_v48, %v799_v41 }
 0x135   :  { %1038 = vst [vmem:[#allocation7] sm:$0xff] %v991_v3 }
 0x138   :  { %v928_v55 = vpop.f32.mrf.mxu2  ;;  %v993_v59 = vpop.f32.mrf.mxu3 }
 0x139   :  { %v929_v57 = vadd.f32 %v928_v55, %v864_v35  ;;  %v801_v50 = vpop.f32.mrf.mxu0  ;;  %v866_v39 = vpop.f32.mrf.mxu1 }
 0x13a   :  { %v802_v23 = vadd.f32 %v1726_v43, %v801_v50 }
 0x13b   :  { %v994_v62 = vadd.f32 %v993_v59, %v929_v57 }
 0x13c   :  { %v867_v30 = vadd.f32 %v866_v39, %v802_v23 }
 0x13d   :  { %1039 = vst [vmem:[#allocation7 + $0x8] sm:$0xff] %v994_v62 }
 0x140   :  { %v931_v22 = vpop.f32.mrf.mxu2  ;;  %v996_v58 = vpop.f32.mrf.mxu3 }
 0x141   :  { %v932_v4 = vadd.f32 %v931_v22, %v867_v30  ;;  %v804_v61 = vpop.f32.mrf.mxu0  ;;  %v869_v5 = vpop.f32.mrf.mxu1 }
 0x142   :  { %v805_v49 = vadd.f32 %v1726_v43, %v804_v61 }
 0x143   :  { %v997_v54 = vadd.f32 %v996_v58, %v932_v4 }
 0x144   :  { %v870_v9 = vadd.f32 %v869_v5, %v805_v49 }
 0x145   :  { %1040 = vst [vmem:[#allocation7 + $0x10] sm:$0xff] %v997_v54 }
 0x148   :  { %v934_v0 = vpop.f32.mrf.mxu2  ;;  %v999_v1 = vpop.f32.mrf.mxu3 }
 0x149   :  { %v935_v12 = vadd.f32 %v934_v0, %v870_v9  ;;  %v807_v6 = vpop.f32.mrf.mxu0  ;;  %v872_v21 = vpop.f32.mrf.mxu1 }
 0x14a   :  { %v808_v29 = vadd.f32 %v1726_v43, %v807_v6 }
 0x14b   :  { %v1000_v7 = vadd.f32 %v999_v1, %v935_v12 }
 0x14c   :  { %v873_v15 = vadd.f32 %v872_v21, %v808_v29 }
 0x14d   :  { %1041 = vst [vmem:[#allocation7 + $0x18] sm:$0xff] %v1000_v7 }
 0x150   :  { %v937_v2 = vpop.f32.mrf.mxu2  ;;  %v1002_v45 = vpop.f32.mrf.mxu3 }
 0x151   :  { %v938_v56 = vadd.f32 %v937_v2, %v873_v15  ;;  %v810_v8 = vpop.f32.mrf.mxu0  ;;  %v875_v20 = vpop.f32.mrf.mxu1 }
 0x152   :  { %v811_v46 = vadd.f32 %v1726_v43, %v810_v8 }
 0x153   :  { %v1003_v53 = vadd.f32 %v1002_v45, %v938_v56 }
 0x154   :  { %v876_v26 = vadd.f32 %v875_v20, %v811_v46 }
 0x155   :  { %1042 = vst [vmem:[#allocation7 + $0x20] sm:$0xff] %v1003_v53 }
 0x158   :  { %v940_v24 = vpop.f32.mrf.mxu2  ;;  %v1005_v38 = vpop.f32.mrf.mxu3 }
 0x159   :  { %v941_v25 = vadd.f32 %v940_v24, %v876_v26  ;;  %v813_v13 = vpop.f32.mrf.mxu0  ;;  %v878_v36 = vpop.f32.mrf.mxu1 }
 0x15a   :  { %v814_v40 = vadd.f32 %v1726_v43, %v813_v13 }
 0x15b   :  { %v1006_v27 = vadd.f32 %v1005_v38, %v941_v25 }
 0x15c   :  { %v879_v28 = vadd.f32 %v878_v36, %v814_v40 }
 0x15d   :  { %1043 = vst [vmem:[#allocation7 + $0x28] sm:$0xff] %v1006_v27 }
 0x160   :  { %v943_v31 = vpop.f32.mrf.mxu2  ;;  %v1008_v10 = vpop.f32.mrf.mxu3 }
 0x161   :  { %v944_v18 = vadd.f32 %v943_v31, %v879_v28  ;;  %v816_v52 = vpop.f32.mrf.mxu0  ;;  %v881_v32 = vpop.f32.mrf.mxu1 }
 0x162   :  { %v817_v34 = vadd.f32 %v1726_v43, %v816_v52 }
 0x163   :  { %v1009_v33 = vadd.f32 %v1008_v10, %v944_v18 }
 0x164   :  { %v882_v16 = vadd.f32 %v881_v32, %v817_v34 }
 0x165   :  { %1044 = vst [vmem:[#allocation7 + $0x30] sm:$0xff] %v1009_v33 }
 0x168   :  { %v946_v11 = vpop.f32.mrf.mxu2  ;;  %v1011_v37 = vpop.f32.mrf.mxu3 }
 0x169   :  { %v947_v51 = vadd.f32 %v946_v11, %v882_v16  ;;  %v819_v60 = vpop.f32.mrf.mxu0  ;;  %v884_v42 = vpop.f32.mrf.mxu1 }
 0x16a   :  { %v820_v19 = vadd.f32 %v1726_v43, %v819_v60 }
 0x16b   :  { %v1012_v63 = vadd.f32 %v1011_v37, %v947_v51 }
 0x16c   :  { %v885_v17 = vadd.f32 %v884_v42, %v820_v19 }
 0x16d   :  { %1045 = vst [vmem:[#allocation7 + $0x38] sm:$0xff] %v1012_v63 }
 0x170   :  { %v949_v47 = vpop.f32.mrf.mxu2  ;;  %v1014_v44 = vpop.f32.mrf.mxu3 }
 0x171   :  { %v950_v14 = vadd.f32 %v949_v47, %v885_v17  ;;  %v822_v48 = vpop.f32.mrf.mxu0  ;;  %v887_v3 = vpop.f32.mrf.mxu1 }
 0x172   :  { %v823_v35 = vadd.f32 %v1726_v43, %v822_v48 }
 0x173   :  { %v1015_v41 = vadd.f32 %v1014_v44, %v950_v14 }
 0x174   :  { %v888_v55 = vadd.f32 %v887_v3, %v823_v35 }
 0x175   :  { %1046 = vst [vmem:[#allocation7 + $0x40] sm:$0xff] %v1015_v41 }
 0x178   :  { %v952_v59 = vpop.f32.mrf.mxu2  ;;  %v1017_v57 = vpop.f32.mrf.mxu3 }
 0x179   :  { %v953_v50 = vadd.f32 %v952_v59, %v888_v55  ;;  %v825_v39 = vpop.f32.mrf.mxu0  ;;  %v890_v62 = vpop.f32.mrf.mxu1 }
 0x17a   :  { %v826_v30 = vadd.f32 %v1726_v43, %v825_v39 }
 0x17b   :  { %v1018_v23 = vadd.f32 %v1017_v57, %v953_v50 }
 0x17c   :  { %v891_v22 = vadd.f32 %v890_v62, %v826_v30 }
 0x17d   :  { %1047 = vst [vmem:[#allocation7 + $0x48] sm:$0xff] %v1018_v23 }
 0x180   :  { %v955_v58 = vpop.f32.mrf.mxu2  ;;  %v1020_v4 = vpop.f32.mrf.mxu3 }
 0x181   :  { %v956_v61 = vadd.f32 %v955_v58, %v891_v22  ;;  %v828_v5 = vpop.f32.mrf.mxu0  ;;  %v893_v54 = vpop.f32.mrf.mxu1 }
 0x182   :  { %v829_v9 = vadd.f32 %v1726_v43, %v828_v5 }
 0x183   :  { %v1021_v49 = vadd.f32 %v1020_v4, %v956_v61 }
 0x184   :  { %v894_v0 = vadd.f32 %v893_v54, %v829_v9 }
 0x185   :  { %1048 = vst [vmem:[#allocation7 + $0x50] sm:$0xff] %v1021_v49 }
 0x188   :  { %v958_v1 = vpop.f32.mrf.mxu2  ;;  %v1023_v12 = vpop.f32.mrf.mxu3 }
 0x189   :  { %v959_v6 = vadd.f32 %v958_v1, %v894_v0  ;;  %v831_v21 = vpop.f32.mrf.mxu0  ;;  %v896_v7 = vpop.f32.mrf.mxu1 }
 0x18a   :  { %v832_v15 = vadd.f32 %v1726_v43, %v831_v21 }
 0x18b   :  { %v1024_v29 = vadd.f32 %v1023_v12, %v959_v6 }
 0x18c   :  { %v897_v2 = vadd.f32 %v896_v7, %v832_v15 }
 0x18d   :  { %1049 = vst [vmem:[#allocation7 + $0x58] sm:$0xff] %v1024_v29 }
 0x190   :  { %v961_v45 = vpop.f32.mrf.mxu2  ;;  %v1026_v56 = vpop.f32.mrf.mxu3 }
 0x191   :  { %v962_v8 = vadd.f32 %v961_v45, %v897_v2  ;;  %v834_v20 = vpop.f32.mrf.mxu0  ;;  %v899_v53 = vpop.f32.mrf.mxu1 }
 0x192   :  { %v835_v26 = vadd.f32 %v1726_v43, %v834_v20 }
 0x193   :  { %v1027_v46 = vadd.f32 %v1026_v56, %v962_v8 }
 0x194   :  { %v900_v24 = vadd.f32 %v899_v53, %v835_v26 }
 0x195   :  { %1050 = vst [vmem:[#allocation7 + $0x60] sm:$0xff] %v1027_v46 }
 0x198   :  { %v964_v38 = vpop.f32.mrf.mxu2  ;;  %v1029_v25 = vpop.f32.mrf.mxu3 }
 0x199   :  { %v965_v13 = vadd.f32 %v964_v38, %v900_v24  ;;  %v837_v36 = vpop.f32.mrf.mxu0  ;;  %v902_v28 = vpop.f32.mrf.mxu1 }
 0x19a   :  { %v838_v40 = vadd.f32 %v1726_v43, %v837_v36 }
 0x19b   :  { %v1030_v27 = vadd.f32 %v1029_v25, %v965_v13 }
 0x19c   :  { %v903_v31 = vadd.f32 %v902_v28, %v838_v40 }
 0x19d   :  { %1051 = vst [vmem:[#allocation7 + $0x68] sm:$0xff] %v1030_v27 }
 0x1a0   :  { %v967_v10 = vpop.f32.mrf.mxu2  ;;  %v1032_v18 = vpop.f32.mrf.mxu3 }
 0x1a1   :  { %v968_v52 = vadd.f32 %v967_v10, %v903_v31  ;;  %v840_v32 = vpop.f32.mrf.mxu0  ;;  %v905_v16 = vpop.f32.mrf.mxu1 }
 0x1a2   :  { %v841_v34 = vadd.f32 %v1726_v43, %v840_v32 }
 0x1a3   :  { %v1033_v33 = vadd.f32 %v1032_v18, %v968_v52 }
 0x1a4   :  { %v906_v11 = vadd.f32 %v905_v16, %v841_v34 }
 0x1a5   :  { %1052 = vst [vmem:[#allocation7 + $0x70] sm:$0xff] %v1033_v33 }
 0x1a8   :  { %v970_v37 = vpop.f32.mrf.mxu2  ;;  %v1035_v60 = vpop.f32.mrf.mxu3 }
 0x1a9   :  { %v971_v51 = vadd.f32 %v970_v37, %v906_v11 }
 0x1ab   :  { %v1036_v42 = vadd.f32 %v1035_v60, %v971_v51 }
 0x1ad   :  { %1053 = vst [vmem:[#allocation7 + $0x78] sm:$0xff] %v1036_v42 }
 0x1ae   :  { %1066 = dma.vmem_to_hbm [thread:$0]  %s1059_s26, 2048, %s1061_s29, [#allocation4], %s1253_s24, %s1253_s24, %s1254_s25  }
 0x1af   :  { %1247 = dma.done.wait [#allocation4], 2048  }
 0x1b0   :  { %1248 = vsyncadd [#allocation4], 4294965248 }
 0x1b1   :  { %1071 = vsyncpa [#allocation3], 1 }
 0x1b2   :  { %1072 = vsyncpa [#allocation6], 1 }
 0x1b3   :  { %1073 = vsyncpa [#allocation4], 1 }

</bundles_post_ra>
